<compile_context>
chip_gen: v6e
topology: v6e:2x2x1
jax: 0.10.0
libtpu: 0.0.40
codegen_flags: <defaults>
</compile_context>

<pallas_src>
import math
from functools import partial

import numpy as np
import jax
import jax.numpy as jnp
from jax.experimental import pallas as pl
from jax.experimental.pallas import tpu as pltpu

OUT_SIZE = 160                            # FaceNetLoss resizes every input to 160x160
EMBED_DIM = 512                           # InceptionResnetV1 embedding width
_VMEM_BUDGET_BYTES = 48 * 1024 * 1024     # stay well under v7x's 64 MiB physical VMEM


def _bilinear_weight_matrix(in_size: int, out_size: int) -> np.ndarray:
    """1-D interpolation matrix matching F.interpolate(mode='bilinear', align_corners=False)."""
    scale = in_size / out_size
    dst = np.arange(out_size, dtype=np.float64)
    src = np.clip((dst + 0.5) * scale - 0.5, 0.0, in_size - 1)
    lo = np.floor(src).astype(np.int64)
    hi = np.minimum(lo + 1, in_size - 1)
    frac = src - lo
    w = np.zeros((out_size, in_size), dtype=np.float64)
    rows = dst.astype(np.int64)
    np.add.at(w, (rows, lo), 1.0 - frac)
    np.add.at(w, (rows, hi), frac)
    return w.astype(np.float32)


# ---------------------------------------------------------------------------
# Kernel: bilinear resize to 160x160 + affine [0,1] -> [-1,1], P planes / step
# ---------------------------------------------------------------------------
def _resize_affine_kernel(x_ref, wh_ref, ww_t_ref, o_ref, *, w_first):
    """P (batch*channel) planes per step: out = 2 * (Wh @ X @ Ww^T) - 1."""
    p, h, w = x_ref.shape
    x = x_ref[...].astype(jnp.float32)                                       # (P, H, W)
    wh = wh_ref[...]                                                         # (160, H)
    ww_t = ww_t_ref[...]                                                     # (W, 160)
    if w_first:
        # Contract W first (W >= H): one flat (P*H, W) @ (W, 160) MXU pass ...
        cols = jnp.dot(x.reshape(p * h, w), ww_t,
                       preferred_element_type=jnp.float32).reshape(p, h, OUT_SIZE)
        # ... then the H-contraction as a batched matmul (batch = planes).
        wh_b = jnp.broadcast_to(wh, (p, OUT_SIZE, h))
        y = jnp.einsum('poh,phj->poj', wh_b, cols,
                       preferred_element_type=jnp.float32)                   # (P, 160, 160)
    else:
        # Contract H first (H > W): batched (160, H) x (P, H, W) ...
        wh_b = jnp.broadcast_to(wh, (p, OUT_SIZE, h))
        rows = jnp.einsum('poh,phw->pow', wh_b, x,
                          preferred_element_type=jnp.float32)                # (P, 160, W)
        # ... then one flat (P*160, W) @ (W, 160) MXU pass.
        y = jnp.dot(rows.reshape(p * OUT_SIZE, w), ww_t,
                    preferred_element_type=jnp.float32).reshape(p, OUT_SIZE, OUT_SIZE)
    o_ref[...] = (2.0 * y - 1.0).astype(o_ref.dtype)


def _choose_plane_block(total_planes: int, h: int, w: int, out_itemsize: int) -> int:
    """Planes per grid step: amortize per-step overhead, fill the MXU, fit VMEM."""
    # Double-buffered input + output tiles, plus the (P*max(h,w),160) f32 intermediate.
    per_plane = 2 * (h * w * 4 + OUT_SIZE * OUT_SIZE * out_itemsize) + max(h, w) * OUT_SIZE * 4
    fixed = (OUT_SIZE * h + w * OUT_SIZE) * 4          # resident weight matrices
    vmem_cap = max(1, (_VMEM_BUDGET_BYTES - fixed) // per_plane)
    # Keep >= 2 grid steps so both v7x TensorCores get work (near-neutral on v5e/v6e).
    two_step_cap = max(1, -(-total_planes // 2))
    cap = min(vmem_cap, two_step_cap, total_planes)
    # P*H multiple of 256 fills the v6e/v7x MXU (and is automatically 128-aligned for v5e).
    align = 256 // math.gcd(256, h)
    p = (cap // align) * align if align <= cap else cap
    return max(1, p)


def preprocess_images(images, out_dtype=jnp.float32):
    """Pallas: NCHW [0,1] -> (N, C, 160, 160) in [-1,1] (PyTorch bilinear, align_corners=False)."""
    n, c, h, w = images.shape
    planes = n * c
    out_itemsize = jnp.dtype(out_dtype).itemsize
    p_blk = _choose_plane_block(planes, h, w, out_itemsize)
    grid = (pl.cdiv(planes, p_blk),)

    wh = jnp.asarray(_bilinear_weight_matrix(h, OUT_SIZE))        # (160, H)
    ww_t = jnp.asarray(_bilinear_weight_matrix(w, OUT_SIZE).T)    # (W, 160), pre-transposed
    x = images.reshape(planes, h, w)                              # no pad / no dtype copy

    # Raise the scoped-VMEM limit only when the (double-buffered) tiles actually need it.
    step_bytes = (2 * p_blk * (h * w * 4 + OUT_SIZE * OUT_SIZE * out_itemsize)
                  + p_blk * max(h, w) * OUT_SIZE * 4
                  + (OUT_SIZE * h + w * OUT_SIZE) * 4)
    cp_kwargs = dict(dimension_semantics=("parallel",))
    if step_bytes > 12 * 1024 * 1024:
        cp_kwargs["vmem_limit_bytes"] = int(min(step_bytes * 5 // 4, 56 * 1024 * 1024))

    out = pl.pallas_call(
        partial(_resize_affine_kernel, w_first=(w >= h)),
        out_shape=jax.ShapeDtypeStruct((planes, OUT_SIZE, OUT_SIZE), out_dtype),
        grid=grid,
        in_specs=[
            pl.BlockSpec((p_blk, h, w), lambda i: (i, 0, 0)),      # P planes per step
            pl.BlockSpec((OUT_SIZE, h), lambda i: (0, 0)),         # resident row-interp weights
            pl.BlockSpec((w, OUT_SIZE), lambda i: (0, 0)),         # resident col-interp weights
        ],
        out_specs=pl.BlockSpec((p_blk, OUT_SIZE, OUT_SIZE), lambda i: (i, 0, 0)),
        compiler_params=pltpu.CompilerParams(**cp_kwargs),
    )(x, wh, ww_t)
    return out.reshape(n, c, OUT_SIZE, OUT_SIZE)


# ---------------------------------------------------------------------------
# loss = mean_b( 1 - <rendered_fv[b], face_fv[b]> )  ==  1 - sum(rv*fv)/B
# ---------------------------------------------------------------------------
def embedding_loss(rendered_fv, face_fv):
    # Per the perf review: a standalone pallas_call here is pure launch overhead for a
    # B*512-element dot+mean, so keep it in plain jnp and let XLA fuse it with the
    # backbone's L2-normalize.
    b = rendered_fv.shape[0]
    rv = rendered_fv.astype(jnp.float32)
    fv = face_fv.astype(jnp.float32)
    return 1.0 - jnp.sum(rv * fv) / b


# ---------------------------------------------------------------------------
# Backbone stand-in + full forward
# ---------------------------------------------------------------------------
def _stub_facenet_embed(images, proj):
    # TODO(synk): the real FaceNetLoss uses InceptionResnetV1(pretrained='vggface2'); its
    # pretrained weights cannot be bundled in a self-contained script, so this deterministic
    # stand-in (global-average-pool -> fixed projection -> L2 normalize) only mimics the
    # interface (NCHW [-1,1] images -> unit-norm (B, 512) embeddings).
    pooled = images.astype(jnp.float32).mean(axis=(2, 3))                 # (B, C)
    emb = pooled @ proj                                                   # (B, 512)
    norm = jnp.sqrt(jnp.sum(emb * emb, axis=1, keepdims=True)) + 1e-12
    return emb / norm


def facenet_loss(rendered_images, face_images, feature_extractor, preprocess_dtype=jnp.float32):
    """JAX/Pallas equivalent of FaceNetLoss.forward(rendered_images, face_images)."""
    face_images = jax.lax.stop_gradient(face_images)                      # face_images.detach()
    b = rendered_images.shape[0]
    # One fused pallas_call for both image sets: halves launch overhead, doubles the grid
    # (better v7x megacore balance) and shares the resident interpolation weights.
    both = jnp.concatenate([rendered_images, face_images], axis=0)
    pre = preprocess_images(both, out_dtype=preprocess_dtype)
    rendered_fv = feature_extractor(pre[:b])
    face_fv = feature_extractor(pre[b:])
    return embedding_loss(rendered_fv, face_fv)


# ---------------------------------------------------------------------------
# Pure-JAX reference (same math) for correctness checking
# ---------------------------------------------------------------------------
def _reference_preprocess(images):
    wh = jnp.asarray(_bilinear_weight_matrix(images.shape[2], OUT_SIZE))
    ww = jnp.asarray(_bilinear_weight_matrix(images.shape[3], OUT_SIZE))
    hi = jax.lax.Precision.HIGHEST
    y = jnp.einsum('oh,nchw->ncow', wh, images.astype(jnp.float32), precision=hi)
    y = jnp.einsum('pw,ncow->ncop', ww, y, precision=hi)
    return 2.0 * y - 1.0


def _reference_loss(rv, fv):
    return jnp.mean(1.0 - jnp.sum(rv * fv, axis=1))


if __name__ == "__main__":
    key = jax.random.PRNGKey(0)
    k_r, k_f, k_p = jax.random.split(key, 3)
    B, C, H, W = 2, 3, 16, 16                 # RGB face crops in [0, 1]
    rendered = jax.random.uniform(k_r, (B, C, H, W), dtype=jnp.float32)
    faces = jax.random.uniform(k_f, (B, C, H, W), dtype=jnp.float32)
    proj = jax.random.normal(k_p, (C, EMBED_DIM), dtype=jnp.float32)

    extractor = lambda imgs: _stub_facenet_embed(imgs, proj)

    loss = jax.block_until_ready(facenet_loss(rendered, faces, extractor))

    # Reference pipeline (same preprocessing math & same stand-in embedder, pure JAX).
    ref_r = _reference_preprocess(rendered)
    ref_f = _reference_preprocess(jax.lax.stop_gradient(faces))
    ref_loss = jax.block_until_ready(_reference_loss(extractor(ref_r), extractor(ref_f)))

    pallas_pre = jax.block_until_ready(
        preprocess_images(jnp.concatenate([rendered, faces], axis=0)))
    ref_pre = jnp.concatenate([ref_r, ref_f], axis=0)

    # Tolerance is deliberately 1e-3: in-kernel dots use the default MXU matmul precision
    # while the reference einsum uses Precision.HIGHEST (perf-review correctness note).
    assert np.allclose(np.asarray(pallas_pre), np.asarray(ref_pre), rtol=1e-3, atol=1e-3)
    assert np.allclose(np.asarray(loss), np.asarray(ref_loss), rtol=1e-3, atol=1e-3)

    print("KERNEL_OK")
</pallas_src>

<mosaic_0001>
module attributes {stable_mosaic.version = 11 : i64} {
  func.func @_resize_affine_kernel(%arg0: i32, %arg1: memref<6x16x16xf32, #tpu.memory_space<vmem>>, %arg2: memref<160x16xf32, #tpu.memory_space<vmem>>, %arg3: memref<16x160xf32, #tpu.memory_space<vmem>>, %arg4: memref<6x160x160xf32, #tpu.memory_space<vmem>>) attributes {dimension_semantics = [#tpu.dimension_semantics<parallel>], iteration_bounds = array<i64: 2>, scalar_prefetch = 0 : i64, scratch_operands = 0 : i64, tpu.core_type = #tpu.core_type<tc>, window_params = [{transform_indices = @transform_0, window_bounds = array<i64: 6, 16, 16>}, {pipeline_mode = #tpu.pipeline_mode<synchronous>, transform_indices = @transform_1, window_bounds = array<i64: 160, 16>}, {pipeline_mode = #tpu.pipeline_mode<synchronous>, transform_indices = @transform_2, window_bounds = array<i64: 16, 160>}, {transform_indices = @transform_3, window_bounds = array<i64: 6, 160, 160>}]} {
    %c0 = arith.constant 0 : index
    %c0_0 = arith.constant 0 : index
    %c0_1 = arith.constant 0 : index
    %0 = vector.load %arg1[%c0, %c0_0, %c0_1] : memref<6x16x16xf32, #tpu.memory_space<vmem>>, vector<6x16x16xf32>
    %c0_2 = arith.constant 0 : index
    %c0_3 = arith.constant 0 : index
    %1 = vector.load %arg2[%c0_2, %c0_3] : memref<160x16xf32, #tpu.memory_space<vmem>>, vector<160x16xf32>
    %c0_4 = arith.constant 0 : index
    %c0_5 = arith.constant 0 : index
    %2 = vector.load %arg3[%c0_4, %c0_5] : memref<16x160xf32, #tpu.memory_space<vmem>>, vector<16x160xf32>
    %3 = vector.shape_cast %0 : vector<6x16x16xf32> to vector<96x16xf32>
    %cst = arith.constant dense<0.000000e+00> : vector<96x160xf32>
    %4 = tpu.matmul %3, %2, %cst {dimension_numbers = #tpu.dot_dimension_numbers<[1], [0], [0], [1], [0, 0, 1, 1], [], []>} : vector<96x16xf32>, vector<16x160xf32>, vector<96x160xf32> -> vector<96x160xf32>
    %5 = vector.shape_cast %4 : vector<96x160xf32> to vector<6x16x160xf32>
    %6 = vector.shape_cast %1 : vector<160x16xf32> to vector<1x160x16xf32>
    %7 = vector.broadcast %6 : vector<1x160x16xf32> to vector<6x160x16xf32>
    "tpu.trace_start"() <{level = 10 : i32, message = "poh,phj->poj"}> : () -> ()
    %cst_6 = arith.constant dense<0.000000e+00> : vector<6x160x160xf32>
    %8 = tpu.matmul %7, %5, %cst_6 {dimension_numbers = #tpu.dot_dimension_numbers<[2], [1], [1], [2], [0, 0, 0, 1, 1, 2], [0], [0]>} : vector<6x160x16xf32>, vector<6x16x160xf32>, vector<6x160x160xf32> -> vector<6x160x160xf32>
    "tpu.trace_stop"() : () -> ()
    %cst_7 = arith.constant 2.000000e+00 : f32
    %9 = vector.broadcast %cst_7 : f32 to vector<6x160x160xf32>
    %10 = arith.mulf %9, %8 : vector<6x160x160xf32>
    %cst_8 = arith.constant 1.000000e+00 : f32
    %11 = vector.broadcast %cst_8 : f32 to vector<6x160x160xf32>
    %12 = arith.subf %10, %11 : vector<6x160x160xf32>
    %c0_9 = arith.constant 0 : index
    %c0_10 = arith.constant 0 : index
    %c0_11 = arith.constant 0 : index
    %13 = vector.load %arg4[%c0_9, %c0_10, %c0_11] : memref<6x160x160xf32, #tpu.memory_space<vmem>>, vector<6x160x160xf32>
    tpu.vector_store %arg4[%c0_9, %c0_10, %c0_11], %12 {strides = array<i32>} : memref<6x160x160xf32, #tpu.memory_space<vmem>>, vector<6x160x160xf32>,
    return
  }
  func.func @transform_0(%arg0: i32) -> (i32, i32, i32) {
    %c0_i32 = arith.constant 0 : i32
    %c0_i32_0 = arith.constant 0 : i32
    %c0_i32_1 = arith.constant 0 : i32
    return %arg0, %c0_i32, %c0_i32_0 : i32, i32, i32
  }
  func.func @transform_1(%arg0: i32) -> (i32, i32) {
    %c0_i32 = arith.constant 0 : i32
    %c0_i32_0 = arith.constant 0 : i32
    %c0_i32_1 = arith.constant 0 : i32
    return %c0_i32, %c0_i32_0 : i32, i32
  }
  func.func @transform_2(%arg0: i32) -> (i32, i32) {
    %c0_i32 = arith.constant 0 : i32
    %c0_i32_0 = arith.constant 0 : i32
    %c0_i32_1 = arith.constant 0 : i32
    return %c0_i32, %c0_i32_0 : i32, i32
  }
  func.func @transform_3(%arg0: i32) -> (i32, i32, i32) {
    %c0_i32 = arith.constant 0 : i32
    %c0_i32_0 = arith.constant 0 : i32
    %c0_i32_1 = arith.constant 0 : i32
    return %arg0, %c0_i32, %c0_i32_0 : i32, i32, i32
  }
}

</mosaic_0001>

<bundles_post_ra>
// kernel: tpu_custom_call.1
= control target key start
LH: loop header
LB: loop body
LE: loop exit
PB: predicated region body
PF: predicated region fallthrough
CT: control target
= control target key end

     0   :  { %8 = vsyncpa [#allocation3], 0  ;;  %s4076_s0 = inlined_call_operand.hbm [shape: f32[12,16,16], index: 0, kind: input, shape index: {}]   ;;  %s4077_s1 = inlined_call_operand.vmem [shape: f32[160,16], index: 1, kind: input, shape index: {}]   ;;  %s4078_s2 = inlined_call_operand.hbm [shape: f32[16,160], index: 2, kind: input, shape index: {}]   ;;  %s4079_s3 = inlined_call_operand.hbm [shape: f32[12,160,160], index: 3, kind: output, shape index: {}]  }
   0x1   :  { %10 = vsyncpa [#allocation3 + $0x1], 0 }
   0x2   :  { %11 = vsyncpa [#allocation6], 0 }
   0x3   :  { %12 = vsyncpa [#allocation4], 0 }
   0x4   :  { %14 = vsyncpa [#allocation4 + $0x1], 0  ;;  %s3019_s12 = smov 0   ;;  %s3021_s13 = smov 0  }
   0x5   :  { %s3023_s14 = smov 0   ;;  %s3025_s15 = smov 0  }
   0x6 LB: > { %s3040_s16 = sadd.s32 4294967295, %s2987_s15   ;;  %s2406_s17 = sadd.s32 4294967294, %s2987_s15   ;;  %s2987_s15 = sphi %s3025_s15, %s4101_s15   ;;  %s2983_s14 = sphi %s3023_s14, %s4100_s14   ;;  %s2979_s13 = sphi %s3021_s13, %s4099_s13   ;;  %s2975_s12 = sphi %s3019_s12, %s4098_s12  }
   0x7   : > { %p40_p0 = scmp.ne.s32.totalorder %s2979_s13, %s2975_s12  ;;  %p4080_p1 = scmp.eq.s32.totalorder %s3040_s16, 0 }
   0x8   : > { %p112_p3 = scmp.eq.s32.totalorder %s2406_s17, 1  ;;  %p2407_p5 = scmp.ge.s32.totalorder %s2987_s15, 1 }
   0x9   : > { %p3049_p4 = por %p4080_p1, %p40_p0  ;;  %p119_p7 = scmp.lt.s32.totalorder %s2987_s15, 3 }
   0xa   : > { %p3054_p6 = por %p112_p3, %p40_p0  ;;  %s2989_s21 = smov [#allocation5]  }
   0xb   : > { %s4084_s18 = scalar_select %p3049_p4, 1, 0 }
   0xc   : > { %s4085_s19 = scalar_select %p3054_p6, 1, 0 }
   0xd   : > { %p3059_p8 = pnand %p2407_p5, %p119_p7  ;;  %s134_s22 = sshll.u32 %s2989_s21, 4  ;;  %s135_s22 = int_to_ptr.vmem [resolvable:$true] %s134_s22 }
   0xe   : > { %s3073_s24 = sadd.s32 1, %s2987_s15   ;;  %s27_s25 = sadd.s32 1, %s2983_s14 }
   0xf   : > { %s4086_s20 = scalar_select %p3059_p8, 1, 0 }
  0x10   : > { %p2808_p9 = pneg %p3059_p8  ;;  %s24_s26 = ssub.s32 %s2987_s15, %s3073_s24 }
  0x11   : > { %s2876_s27 = scalar_lea.vmem %s135_s22, 512  ;;  %p2884_p5 = scmp.lt.s32.totalorder %s135_s22, %s135_s22 }
  0x12   : > { %p3068_p11 = pnand %p2808_p9, %p4080_p1  ;;  %p2877_p13 = scmp.ne.s32.totalorder %s135_s22, %s2876_s27 }
  0x13   : > { %p2885_p7 = scmp.lt.s32.totalorder %s2876_s27, %s2876_s27 }
  0x14   : > { %p2867_p12 = pneg %p3068_p11 }
  0x15   : > { %p2886_p10 = por %p2885_p7, %p2884_p5 }
  0x16   : > { %p2879_p0 = pnand %p2877_p13, %p2867_p12 }
  0x18   : > { %p2880_p3 = pneg %p2879_p0 }
  0x1a   : > { %p2887_p2 = pnand %p2886_p10, %p2880_p3 }
  0x1c   : > { %2890 = shalt.err (!%p2887_p2)
}
  0x1d   : > { %s2990_s28 = smov 256   ;;  %s2991_s29 = smov 16  }
  0x1e   : > { %2811 = dma.hbm_to_vmem [thread:$0]  (!%p3068_p11), %s4078_s2, 512, %s135_s22, [#allocation6], %s2990_s28, %s2990_s28, %s2991_s29  }
  0x1f   : > { %p25_p9 = scmp.eq.s32.totalorder %s24_s26, 0  ;;  %p34_p12 = scmp.ne.s32.totalorder %s2983_s14, %s2979_s13 }
  0x20   : > { %p35_p10 = scmp.eq.s32.totalorder %s2987_s15, 0  ;;  %p2821_p2 = scmp.lt.s32.totalorder %s2987_s15, 2 }
  0x21   : > { %s3090_s5 = scalar_select %p25_p9, %s2983_s14, %s27_s25  }
  0x22   : > { %p36_p13 = por %p35_p10, %p34_p12  ;;  %p4088_p0 = scmp.eq.s32.totalorder %s3040_s16, 1 }
  0x23   : > { %s148_s7 = sand.u32 1, %s2983_s14   ;;  %s2791_s8 = smul.u32 1536, %s2987_s15 }
  0x24   : > { %p3094_p3 = por %p4088_p0, %p34_p12  ;;  %s2796_s9 = smul.u32 96, %s148_s7 }
  0x25   : > { %s3103_s17 = scalar_lea.hbm %s4076_s0, %s2791_s8  ;;  %p3105_p11 = pnand %p2821_p2, %p36_p13 }
  0x26   : > { %s4089_s6 = scalar_select %p3094_p3, 1, 0 }
  0x27   : > { %s152_s22 = scalar_lea.vmem [#allocation2], %s2796_s9  ;;  %s3111_s25 = scalar_lea.sflag [#allocation3], %s148_s7 }
  0x28   : > { %s160_s23 = sshll.u32 %s152_s22, 4  ;;  %s2891_s26 = scalar_lea.hbm %s3103_s17, 1536  ;;  %s3109_s23 = int_to_ptr.vmem [resolvable:$true] %s160_s23 }
  0x29   : > { %p2892_p5 = scmp.ne.s32.totalorder %s3103_s17, %s2891_s26  ;;  %p2893_p7 = pneg %p3105_p11 }
  0x2a   : > { %s2896_s29 = scalar_lea.hbm %s4076_s0, 3072  ;;  %p2897_p10 = scmp.lt.s32.totalorder %s3103_s17, %s4076_s0 }
  0x2b   : > { %p2894_p9 = pnand %p2893_p7, %p2892_p5  ;;  %p2898_p2 = scmp.lt.s32.totalorder %s2896_s29, %s2891_s26 }
  0x2d   : > { %p2895_p12 = pneg %p2894_p9  ;;  %p2899_p13 = por %p2898_p2, %p2897_p10 }
  0x2f   : > { %p2900_p0 = pnand %p2899_p13, %p2895_p12 }
  0x31   : > { %2903 = shalt.err (!%p2900_p0)
}
  0x32   : > { %s2904_s7 = scalar_lea.vmem %s3109_s23, 1536  ;;  %s2992_s8 = smov [#allocation2]  }
  0x33   : > { %p2905_p1 = scmp.ne.s32.totalorder %s3109_s23, %s2904_s7  ;;  %s2909_s9 = sshll.u32 %s2992_s8, 4  ;;  %s2910_s9 = int_to_ptr.vmem [resolvable:$false] %s2909_s9 }
  0x34   : > { %s2911_s10 = scalar_lea.vmem %s2910_s9, 3072  ;;  %p2912_p9 = scmp.lt.s32.totalorder %s3109_s23, %s2910_s9 }
  0x35   : > { %p2907_p6 = pnand %p2905_p1, %p2893_p7  ;;  %p2913_p3 = scmp.lt.s32.totalorder %s2911_s10, %s2904_s7 }
  0x37   : > { %p2908_p5 = pneg %p2907_p6  ;;  %p2914_p4 = por %p2913_p3, %p2912_p9 }
  0x39   : > { %p2915_p8 = pnand %p2914_p4, %p2908_p5 }
  0x3b   : > { %2918 = shalt.err (!%p2915_p8)
}
  0x3c   : > { %s2993_s11 = smov 128   ;;  %s2994_s22 = smov 8  }
  0x3d   : > { %2815 = dma.hbm_to_vmem [thread:$0]  (!%p3105_p11), %s3103_s17, 1536, %s3109_s23, %s3111_s25, %s2993_s11, %s2993_s11, %s2994_s22  }
  0x3e   : > { %p4091_p1 = scmp.ne.s32.totalorder %s4086_s20, 0 }
  0x3f   : > { %s3135_s26 = sand.u32 (!%p4091_p1), 1, %s2979_s13   ;;  %p4092_p4 = scmp.ne.s32.totalorder (!%p4091_p1), %s4084_s18, 0 }
  0x40   : > { %172 = sbr.rel (%p4091_p1) target bundleno = 740 (0x2e4), region = 32  ;;  %s175_s28 = scalar_lea.sflag (!%p4091_p1), [#allocation3], %s3135_s26 }
  0x41   : > { %s2797_s27 = smul.u32 (!%p4091_p1), 96, %s3135_s26 }
  0x43   : > { %s3139_s29 = scalar_lea.vmem (!%p4091_p1), [#allocation2], %s2797_s27 }
  0x45   : > { %2962 = dma.done.wait (%p4092_p4), %s175_s28, 1536  }
  0x46   : > { %2964 = vsyncadd (%p4092_p4), %s175_s28, 4294965760  ;;  %p4093_p6 = scmp.eq.s32.totalorder %s3040_s16, 0 }
  0x48   : > { %2966 = dma.done.wait (%p4093_p6), [#allocation6], 512   ;;  %p4094_p8 = pmov %p4093_p6 }
  0x49   : > { %v2995_v0 = vmov 0.0   ;;  %v242_v1 = vld [vmem:[#allocation5 + $0x18] sm:$0xff]  ;;  %v241_v2 = vld [vmem:[#allocation5 + $0x10] sm:$0xff]  ;;  %v240_v3 = vld [vmem:[#allocation5 + $0x8] sm:$0xff]  ;;  %vm243_vm0 = vcmask 130048   ;;  %s2798_s30 = smul.u32 1920, %s3135_s26 }
  0x4a   : > { %2968 = vsyncadd (%p4094_p8), [#allocation6], 4294966784  ;;  %344 = vmatprep.mubr.f32.mxu0 %v2995_v0  ;;  %380 = vmatprep.mubr.f32.mxu1 %v2995_v0  ;;  %v239_v4 = vld [vmem:[#allocation5] sm:$0xff]  ;;  %v213_v6 = vld [vmem:[%s3139_s29 + $0x30] sm:$0xff]  ;;  %vm2068_vm1 = vcmask 261120   ;;  %s2823_s7 = smul.u32 30720, %s3040_s16 }
  0x4b   : > { %308 = vmatprep.subr.mxu0 %v242_v1  ;;  %2792 = vmatprep.subr.mxu1 %v242_v1  ;;  %v207_v5 = vld [vmem:[%s3139_s29] sm:$0xff]  ;;  %v208_v7 = vld [vmem:[%s3139_s29 + $0x8] sm:$0xff]  ;;  %v214_v8 = vld [vmem:[%s3139_s29 + $0x38] sm:$0xff]  ;;  %s3596_s4 = scalar_lea.vmem [#allocation7], %s2798_s30  ;;  %s2309_s16 = scalar_lea.sflag [#allocation4], %s3135_s26 }
  0x4c   : > { %309 = vmatpush1.msra.mxu0 %v241_v2  ;;  %2794 = vmatpush1.msra.mxu1 %v241_v2  ;;  %v209_v9 = vld [vmem:[%s3139_s29 + $0x10] sm:$0xff]  ;;  %v215_v10 = vld [vmem:[%s3139_s29 + $0x40] sm:$0xff]  ;;  %v210_v11 = vld [vmem:[%s3139_s29 + $0x18] sm:$0xff]  ;;  %s2323_s8 = sshll.u32 %s3596_s4, 4  ;;  %s4028_s11 = scalar_lea.hbm %s4079_s3, %s2823_s7  ;;  %s4030_s8 = int_to_ptr.vmem [resolvable:$true] %s2323_s8 }
  0x4d   : > { %310 = vmatprep.subr.mxu0 %v240_v3  ;;  %2793 = vmatprep.subr.mxu1 %v240_v3  ;;  %v216_v12 = vld [vmem:[%s3139_s29 + $0x48] sm:$0xff]  ;;  %v211_v13 = vld [vmem:[%s3139_s29 + $0x20] sm:$0xff]  ;;  %v217_v14 = vld [vmem:[%s3139_s29 + $0x50] sm:$0xff]  ;;  %s2919_s22 = scalar_lea.vmem %s4030_s8, 30720  ;;  %p4095_p11 = scmp.ne.s32.totalorder %s4089_s6, 0 }
  0x4e   : > { %311 = vmatpush1.msra.mxu0 %v239_v4  ;;  %2795 = vmatpush1.msra.mxu1 %v239_v4  ;;  %v212_v15 = vld [vmem:[%s3139_s29 + $0x28] sm:$0xff]  ;;  %v218_v16 = vld [vmem:[%s3139_s29 + $0x58] sm:$0xff]  ;;  %v3190_v26 = vld [vmem:[%s4077_s1] sm:$0xff]  ;;  %p2920_p3 = scmp.ne.s32.totalorder %s4030_s8, %s2919_s22  ;;  %s2996_s27 = smov [#allocation7]  }
  0x4f   : > { %2414 = vmatmul.mubr.msk.f32.vlgmr.msra.gmra.mxu0 %vm243_vm0, %v207_v5  ;;  %2420 = vmatmul.mubr.msk.f32.vlgmr.msra.gmra.mxu1 %vm243_vm0, %v213_v6  ;;  %v3202_v31 = vld [vmem:[%s4077_s1 + $0x8] sm:$0xff]  ;;  %v3212_v36 = vld [vmem:[%s4077_s1 + $0x10] sm:$0xff]  ;;  %v3229_v43 = vld [vmem:[%s4077_s1 + $0x18] sm:$0xff]  ;;  %s2923_s28 = sshll.u32 %s2996_s27, 4  ;;  %s2924_s28 = int_to_ptr.vmem [resolvable:$false] %s2923_s28 }
  0x50   : > { %350 = vmatprep.mubr.f32.mxu0 %v2995_v0  ;;  %386 = vmatprep.mubr.f32.mxu1 %v2995_v0  ;;  %v3239_v45 = vld [vmem:[%s4077_s1 + $0x20] sm:$0xff]  ;;  %v3251_v46 = vld [vmem:[%s4077_s1 + $0x28] sm:$0xff]  ;;  %v3262_v47 = vld [vmem:[%s4077_s1 + $0x30] sm:$0xff]  ;;  %p2921_p7 = pnand %p2920_p3, %p4095_p11  ;;  %s2925_s29 = scalar_lea.vmem %s2924_s28, 61440 }
  0x51   : > { %v3273_v48 = vld [vmem:[%s4077_s1 + $0x38] sm:$0xff]  ;;  %v3284_v49 = vld [vmem:[%s4077_s1 + $0x40] sm:$0xff]  ;;  %v3295_v50 = vld [vmem:[%s4077_s1 + $0x48] sm:$0xff]  ;;  %p2926_p10 = scmp.lt.s32.totalorder %s4030_s8, %s2924_s28  ;;  %p2927_p2 = scmp.lt.s32.totalorder %s2925_s29, %s2919_s22 }
  0x52   : > { %v3306_v51 = vld [vmem:[%s4077_s1 + $0x50] sm:$0xff]  ;;  %v3317_v52 = vld [vmem:[%s4077_s1 + $0x58] sm:$0xff]  ;;  %v3328_v53 = vld [vmem:[%s4077_s1 + $0x60] sm:$0xff]  ;;  %p2922_p12 = pneg %p2921_p7 }
  0x53   : > { %2415 = vmatmul.mubr.msk.f32.gmra.mxu0 %vm243_vm0, %v208_v7  ;;  %2421 = vmatmul.mubr.msk.f32.gmra.mxu1 %vm243_vm0, %v214_v8  ;;  %v3339_v54 = vld [vmem:[%s4077_s1 + $0x68] sm:$0xff]  ;;  %v3350_v55 = vld [vmem:[%s4077_s1 + $0x70] sm:$0xff]  ;;  %v3361_v56 = vld [vmem:[%s4077_s1 + $0x78] sm:$0xff]  ;;  %p2928_p13 = por %p2927_p2, %p2926_p10 }
  0x54   : > { %356 = vmatprep.mubr.f32.mxu0 %v2995_v0  ;;  %392 = vmatprep.mubr.f32.mxu1 %v2995_v0  ;;  %v3372_v57 = vld [vmem:[%s4077_s1 + $0x80] sm:$0xff]  ;;  %v3383_v58 = vld [vmem:[%s4077_s1 + $0x88] sm:$0xff]  ;;  %v3394_v59 = vld [vmem:[%s4077_s1 + $0x90] sm:$0xff] }
  0x55   : > { %v3405_v60 = vld [vmem:[%s4077_s1 + $0x98] sm:$0xff]  ;;  %p2929_p0 = pnand %p2928_p13, %p2922_p12 }
  0x57   : > { %2416 = vmatmul.mubr.msk.f32.gmra.mxu0 %vm243_vm0, %v209_v9  ;;  %2422 = vmatmul.mubr.msk.f32.gmra.mxu1 %vm243_vm0, %v215_v10 }
  0x58   : > { %362 = vmatprep.mubr.f32.mxu0 %v2995_v0  ;;  %398 = vmatprep.mubr.f32.mxu1 %v2995_v0 }
  0x5b   : > { %2417 = vmatmul.mubr.msk.f32.gmra.mxu0 %vm243_vm0, %v210_v11  ;;  %2423 = vmatmul.mubr.msk.f32.gmra.mxu1 %vm243_vm0, %v216_v12 }
  0x5c   : > { %368 = vmatprep.mubr.f32.mxu0 %v2995_v0  ;;  %404 = vmatprep.mubr.f32.mxu1 %v2995_v0 }
  0x5f   : > { %2418 = vmatmul.mubr.msk.f32.gmra.mxu0 %vm243_vm0, %v211_v13  ;;  %2424 = vmatmul.mubr.msk.f32.gmra.mxu1 %vm243_vm0, %v217_v14 }
  0x60   : > { %374 = vmatprep.mubr.f32.mxu0 %v2995_v0  ;;  %410 = vmatprep.mubr.f32.mxu1 %v2995_v0 }
  0x63   : > { %2419 = vmatmul.mubr.msk.f32.gmra.mxu0 %vm243_vm0, %v212_v15  ;;  %2425 = vmatmul.mubr.msk.f32.gmra.mxu1 %vm243_vm0, %v218_v16 }
  0x64   : > { %541 = vmatprep.mubr.f32.mxu1 %v2995_v0  ;;  %726 = vmatprep.mubr.f32.mxu0 %v2995_v0 }
 0x10f   : > { %v346_v17 = vpop.f32.mrf.mxu0  ;;  %v382_v18 = vpop.f32.mrf.mxu1 }
 0x111   : > { %v348_v19 = vpop.f32.mrf.mxu0  ;;  %v384_v20 = vpop.f32.mrf.mxu1 }
 0x113   : > { %v352_v21 = vpop.f32.mrf.mxu0  ;;  %v388_v22 = vpop.f32.mrf.mxu1 }
 0x115   : > { %v354_v23 = vpop.f32.mrf.mxu0  ;;  %v390_v24 = vpop.f32.mrf.mxu1 }
 0x116   : > { %505 = vmatprep.subr.mxu1 %v354_v23 }
 0x117   : > { %v358_v25 = vpop.f32.mrf.mxu0  ;;  %506 = vmatpush1.msra.mxu1 %v352_v21  ;;  %v3192_v27 = vpop.f32.mrf.mxu1 }
 0x118   : > { %507 = vmatprep.subr.mxu1 %v348_v19 }
 0x119   : > { %v360_v28 = vpop.f32.mrf.mxu0  ;;  %508 = vmatpush1.msra.mxu1 %v346_v17  ;;  %v3194_v29 = vpop.f32.mrf.mxu1 }
 0x11a   : > { %2426 = vmatmul.mubr.msk.f32.vlgmr.msra.gmra.mxu1 %vm243_vm0, %v3190_v26 }
 0x11b   : > { %v364_v30 = vpop.f32.mrf.mxu0  ;;  %547 = vmatprep.mubr.f32.mxu1 %v2995_v0  ;;  %v3204_v32 = vpop.f32.mrf.mxu1 }
 0x11d   : > { %v366_v33 = vpop.f32.mrf.mxu0  ;;  %v402_v34 = vpop.f32.mrf.mxu1 }
 0x11e   : > { %690 = vmatprep.subr.mxu0 %v366_v33  ;;  %2427 = vmatmul.mubr.msk.f32.gmra.mxu1 %vm243_vm0, %v3202_v31 }
 0x11f   : > { %691 = vmatpush1.msra.mxu0 %v364_v30  ;;  %v370_v35 = vpop.f32.mrf.mxu0  ;;  %553 = vmatprep.mubr.f32.mxu1 %v2995_v0  ;;  %v3214_v37 = vpop.f32.mrf.mxu1 }
 0x120   : > { %692 = vmatprep.subr.mxu0 %v360_v28 }
 0x121   : > { %693 = vmatpush1.msra.mxu0 %v358_v25  ;;  %v372_v38 = vpop.f32.mrf.mxu0  ;;  %v3216_v39 = vpop.f32.mrf.mxu1 }
 0x122   : > { %1060 = vmatprep.subr.mxu0 %v390_v24  ;;  %2428 = vmatmul.mubr.msk.f32.gmra.mxu1 %vm243_vm0, %v3212_v36 }
 0x123   : > { %v376_v40 = vpop.f32.mrf.mxu0  ;;  %2446 = vmatmul.mubr.msk.f32.vlgmr.msra.gmra.mxu0 %vm243_vm0, %v3190_v26  ;;  %559 = vmatprep.mubr.f32.mxu1 %v2995_v0  ;;  %v3224_v41 = vpop.f32.mrf.mxu1 }
 0x124   : > { %1061 = vmatpush1.msra.mxu0 %v388_v22  ;;  %732 = vmatprep.mubr.f32.mxu0 %v2995_v0 }
 0x125   : > { %v378_v42 = vpop.f32.mrf.mxu0  ;;  %1062 = vmatprep.subr.mxu0 %v384_v20  ;;  %v414_v44 = vpop.f32.mrf.mxu1 }
 0x126   : > { %875 = vmatprep.subr.mxu1 %v378_v42  ;;  %1063 = vmatpush1.msra.mxu0 %v382_v18 }
 0x127   : > { %876 = vmatpush1.msra.mxu1 %v376_v40  ;;  %2447 = vmatmul.mubr.msk.f32.gmra.mxu0 %vm243_vm0, %v3202_v31 }
 0x128   : > { %877 = vmatprep.subr.mxu1 %v372_v38  ;;  %2429 = vmatmul.mubr.msk.f32.gmra.mxu1 %vm243_vm0, %v3229_v43 }
 0x129   : > { %878 = vmatpush1.msra.mxu1 %v370_v35  ;;  %565 = vmatprep.mubr.f32.mxu1 %v2995_v0 }
 0x12a   : > { %738 = vmatprep.mubr.f32.mxu0 %v2995_v0  ;;  %1245 = vmatprep.subr.mxu1 %v402_v34 }
 0x12b   : > { %2448 = vmatmul.mubr.msk.f32.gmra.mxu0 %vm243_vm0, %v3212_v36  ;;  %1430 = vmatprep.subr.mxu0 %v414_v44 }
 0x12c   : > { %2430 = vmatmul.mubr.msk.f32.gmra.mxu1 %vm243_vm0, %v3239_v45  ;;  %744 = vmatprep.mubr.f32.mxu0 %v2995_v0 }
 0x12d   : > { %571 = vmatprep.mubr.f32.mxu1 %v2995_v0 }
 0x12f   : > { %2449 = vmatmul.mubr.msk.f32.gmra.mxu0 %vm243_vm0, %v3229_v43 }
 0x130   : > { %2431 = vmatmul.mubr.msk.f32.gmra.mxu1 %vm243_vm0, %v3251_v46  ;;  %750 = vmatprep.mubr.f32.mxu0 %v2995_v0 }
 0x131   : > { %577 = vmatprep.mubr.f32.mxu1 %v2995_v0 }
 0x133   : > { %2450 = vmatmul.mubr.msk.f32.gmra.mxu0 %vm243_vm0, %v3239_v45 }
 0x134   : > { %2432 = vmatmul.mubr.msk.f32.gmra.mxu1 %vm243_vm0, %v3262_v47  ;;  %756 = vmatprep.mubr.f32.mxu0 %v2995_v0 }
 0x135   : > { %583 = vmatprep.mubr.f32.mxu1 %v2995_v0 }
 0x137   : > { %2451 = vmatmul.mubr.msk.f32.gmra.mxu0 %vm243_vm0, %v3251_v46 }
 0x138   : > { %2433 = vmatmul.mubr.msk.f32.gmra.mxu1 %vm243_vm0, %v3273_v48  ;;  %762 = vmatprep.mubr.f32.mxu0 %v2995_v0 }
 0x139   : > { %589 = vmatprep.mubr.f32.mxu1 %v2995_v0 }
 0x13b   : > { %2452 = vmatmul.mubr.msk.f32.gmra.mxu0 %vm243_vm0, %v3262_v47 }
 0x13c   : > { %2434 = vmatmul.mubr.msk.f32.gmra.mxu1 %vm243_vm0, %v3284_v49  ;;  %768 = vmatprep.mubr.f32.mxu0 %v2995_v0 }
 0x13d   : > { %595 = vmatprep.mubr.f32.mxu1 %v2995_v0 }
 0x13f   : > { %2453 = vmatmul.mubr.msk.f32.gmra.mxu0 %vm243_vm0, %v3273_v48 }
 0x140   : > { %2435 = vmatmul.mubr.msk.f32.gmra.mxu1 %vm243_vm0, %v3295_v50  ;;  %774 = vmatprep.mubr.f32.mxu0 %v2995_v0 }
 0x141   : > { %601 = vmatprep.mubr.f32.mxu1 %v2995_v0 }
 0x143   : > { %2454 = vmatmul.mubr.msk.f32.gmra.mxu0 %vm243_vm0, %v3284_v49 }
 0x144   : > { %2436 = vmatmul.mubr.msk.f32.gmra.mxu1 %vm243_vm0, %v3306_v51  ;;  %780 = vmatprep.mubr.f32.mxu0 %v2995_v0 }
 0x145   : > { %607 = vmatprep.mubr.f32.mxu1 %v2995_v0 }
 0x147   : > { %2455 = vmatmul.mubr.msk.f32.gmra.mxu0 %vm243_vm0, %v3295_v50 }
 0x148   : > { %2437 = vmatmul.mubr.msk.f32.gmra.mxu1 %vm243_vm0, %v3317_v52  ;;  %786 = vmatprep.mubr.f32.mxu0 %v2995_v0 }
 0x149   : > { %613 = vmatprep.mubr.f32.mxu1 %v2995_v0 }
 0x14b   : > { %2456 = vmatmul.mubr.msk.f32.gmra.mxu0 %vm243_vm0, %v3306_v51 }
 0x14c   : > { %2438 = vmatmul.mubr.msk.f32.gmra.mxu1 %vm243_vm0, %v3328_v53  ;;  %792 = vmatprep.mubr.f32.mxu0 %v2995_v0 }
 0x14d   : > { %619 = vmatprep.mubr.f32.mxu1 %v2995_v0 }
 0x14f   : > { %2457 = vmatmul.mubr.msk.f32.gmra.mxu0 %vm243_vm0, %v3317_v52 }
 0x150   : > { %2439 = vmatmul.mubr.msk.f32.gmra.mxu1 %vm243_vm0, %v3339_v54  ;;  %798 = vmatprep.mubr.f32.mxu0 %v2995_v0 }
 0x151   : > { %625 = vmatprep.mubr.f32.mxu1 %v2995_v0 }
 0x153   : > { %2458 = vmatmul.mubr.msk.f32.gmra.mxu0 %vm243_vm0, %v3328_v53 }
 0x154   : > { %2440 = vmatmul.mubr.msk.f32.gmra.mxu1 %vm243_vm0, %v3350_v55  ;;  %804 = vmatprep.mubr.f32.mxu0 %v2995_v0 }
 0x155   : > { %631 = vmatprep.mubr.f32.mxu1 %v2995_v0 }
 0x157   : > { %2459 = vmatmul.mubr.msk.f32.gmra.mxu0 %vm243_vm0, %v3339_v54 }
 0x158   : > { %2441 = vmatmul.mubr.msk.f32.gmra.mxu1 %vm243_vm0, %v3361_v56  ;;  %810 = vmatprep.mubr.f32.mxu0 %v2995_v0 }
 0x159   : > { %637 = vmatprep.mubr.f32.mxu1 %v2995_v0 }
 0x15b   : > { %2460 = vmatmul.mubr.msk.f32.gmra.mxu0 %vm243_vm0, %v3350_v55 }
 0x15c   : > { %2442 = vmatmul.mubr.msk.f32.gmra.mxu1 %vm243_vm0, %v3372_v57  ;;  %816 = vmatprep.mubr.f32.mxu0 %v2995_v0 }
 0x15d   : > { %643 = vmatprep.mubr.f32.mxu1 %v2995_v0 }
 0x15f   : > { %2461 = vmatmul.mubr.msk.f32.gmra.mxu0 %vm243_vm0, %v3361_v56 }
 0x160   : > { %2443 = vmatmul.mubr.msk.f32.gmra.mxu1 %vm243_vm0, %v3383_v58  ;;  %822 = vmatprep.mubr.f32.mxu0 %v2995_v0 }
 0x161   : > { %649 = vmatprep.mubr.f32.mxu1 %v2995_v0 }
 0x163   : > { %2462 = vmatmul.mubr.msk.f32.gmra.mxu0 %vm243_vm0, %v3372_v57 }
 0x164   : > { %2444 = vmatmul.mubr.msk.f32.gmra.mxu1 %vm243_vm0, %v3394_v59  ;;  %828 = vmatprep.mubr.f32.mxu0 %v2995_v0 }
 0x165   : > { %655 = vmatprep.mubr.f32.mxu1 %v2995_v0 }
 0x167   : > { %2463 = vmatmul.mubr.msk.f32.gmra.mxu0 %vm243_vm0, %v3383_v58 }
 0x168   : > { %2445 = vmatmul.mubr.msk.f32.gmra.mxu1 %vm243_vm0, %v3405_v60  ;;  %834 = vmatprep.mubr.f32.mxu0 %v2995_v0 }
 0x169   : > { %911 = vmatprep.mubr.f32.mxu1 %v2995_v0 }
 0x16b   : > { %2464 = vmatmul.mubr.msk.f32.gmra.mxu0 %vm243_vm0, %v3394_v59 }
 0x16c   : > { %2466 = vmatmul.mubr.msk.f32.vlgmr.msra.gmra.mxu1 %vm243_vm0, %v3190_v26  ;;  %840 = vmatprep.mubr.f32.mxu0 %v2995_v0 }
 0x16d   : > { %1246 = vmatpush1.msra.mxu1 %v3204_v32  ;;  %917 = vmatprep.mubr.f32.mxu1 %v2995_v0 }
 0x16e   : > { %1247 = vmatprep.subr.mxu1 %v3194_v29 }
 0x16f   : > { %1248 = vmatpush1.msra.mxu1 %v3192_v27  ;;  %2465 = vmatmul.mubr.msk.f32.gmra.mxu0 %vm243_vm0, %v3405_v60 }
 0x170   : > { %1096 = vmatprep.mubr.f32.mxu0 %v2995_v0  ;;  %2467 = vmatmul.mubr.msk.f32.gmra.mxu1 %vm243_vm0, %v3202_v31 }
 0x171   : > { %923 = vmatprep.mubr.f32.mxu1 %v2995_v0 }
 0x173   : > { %2486 = vmatmul.mubr.msk.f32.vlgmr.msra.gmra.mxu0 %vm243_vm0, %v3190_v26 }
 0x174   : > { %1431 = vmatpush1.msra.mxu0 %v3224_v41  ;;  %1102 = vmatprep.mubr.f32.mxu0 %v2995_v0 }
 0x175   : > { %1432 = vmatprep.subr.mxu0 %v3216_v39  ;;  %2468 = vmatmul.mubr.msk.f32.gmra.mxu1 %vm243_vm0, %v3212_v36 }
 0x176   : > { %1433 = vmatpush1.msra.mxu0 %v3214_v37  ;;  %929 = vmatprep.mubr.f32.mxu1 %v2995_v0 }
 0x177   : > { %2487 = vmatmul.mubr.msk.f32.gmra.mxu0 %vm243_vm0, %v3202_v31 }
 0x178   : > { %1108 = vmatprep.mubr.f32.mxu0 %v2995_v0 }
 0x179   : > { %2469 = vmatmul.mubr.msk.f32.gmra.mxu1 %vm243_vm0, %v3229_v43 }
 0x17a   : > { %935 = vmatprep.mubr.f32.mxu1 %v2995_v0 }
 0x17b   : > { %2488 = vmatmul.mubr.msk.f32.gmra.mxu0 %vm243_vm0, %v3212_v36 }
 0x17c   : > { %1114 = vmatprep.mubr.f32.mxu0 %v2995_v0 }
 0x17d   : > { %2470 = vmatmul.mubr.msk.f32.gmra.mxu1 %vm243_vm0, %v3239_v45 }
 0x17e   : > { %941 = vmatprep.mubr.f32.mxu1 %v2995_v0 }
 0x17f   : > { %2489 = vmatmul.mubr.msk.f32.gmra.mxu0 %vm243_vm0, %v3229_v43 }
 0x180   : > { %1120 = vmatprep.mubr.f32.mxu0 %v2995_v0 }
 0x181   : > { %2471 = vmatmul.mubr.msk.f32.gmra.mxu1 %vm243_vm0, %v3251_v46 }
 0x182   : > { %947 = vmatprep.mubr.f32.mxu1 %v2995_v0 }
 0x183   : > { %2490 = vmatmul.mubr.msk.f32.gmra.mxu0 %vm243_vm0, %v3239_v45 }
 0x184   : > { %1126 = vmatprep.mubr.f32.mxu0 %v2995_v0 }
 0x185   : > { %2472 = vmatmul.mubr.msk.f32.gmra.mxu1 %vm243_vm0, %v3262_v47 }
 0x186   : > { %953 = vmatprep.mubr.f32.mxu1 %v2995_v0 }
 0x187   : > { %2491 = vmatmul.mubr.msk.f32.gmra.mxu0 %vm243_vm0, %v3251_v46 }
 0x188   : > { %1132 = vmatprep.mubr.f32.mxu0 %v2995_v0 }
 0x189   : > { %2473 = vmatmul.mubr.msk.f32.gmra.mxu1 %vm243_vm0, %v3273_v48 }
 0x18a   : > { %959 = vmatprep.mubr.f32.mxu1 %v2995_v0 }
 0x18b   : > { %2492 = vmatmul.mubr.msk.f32.gmra.mxu0 %vm243_vm0, %v3262_v47 }
 0x18c   : > { %1138 = vmatprep.mubr.f32.mxu0 %v2995_v0 }
 0x18d   : > { %2474 = vmatmul.mubr.msk.f32.gmra.mxu1 %vm243_vm0, %v3284_v49 }
 0x18e   : > { %965 = vmatprep.mubr.f32.mxu1 %v2995_v0 }
 0x18f   : > { %2493 = vmatmul.mubr.msk.f32.gmra.mxu0 %vm243_vm0, %v3273_v48 }
 0x190   : > { %1144 = vmatprep.mubr.f32.mxu0 %v2995_v0 }
 0x191   : > { %2475 = vmatmul.mubr.msk.f32.gmra.mxu1 %vm243_vm0, %v3295_v50 }
 0x192   : > { %971 = vmatprep.mubr.f32.mxu1 %v2995_v0 }
 0x193   : > { %2494 = vmatmul.mubr.msk.f32.gmra.mxu0 %vm243_vm0, %v3284_v49 }
 0x194   : > { %1150 = vmatprep.mubr.f32.mxu0 %v2995_v0 }
 0x195   : > { %2476 = vmatmul.mubr.msk.f32.gmra.mxu1 %vm243_vm0, %v3306_v51 }
 0x196   : > { %977 = vmatprep.mubr.f32.mxu1 %v2995_v0 }
 0x197   : > { %2495 = vmatmul.mubr.msk.f32.gmra.mxu0 %vm243_vm0, %v3295_v50 }
 0x198   : > { %1156 = vmatprep.mubr.f32.mxu0 %v2995_v0 }
 0x199   : > { %2477 = vmatmul.mubr.msk.f32.gmra.mxu1 %vm243_vm0, %v3317_v52 }
 0x19a   : > { %983 = vmatprep.mubr.f32.mxu1 %v2995_v0 }
 0x19b   : > { %2496 = vmatmul.mubr.msk.f32.gmra.mxu0 %vm243_vm0, %v3306_v51 }
 0x19c   : > { %1162 = vmatprep.mubr.f32.mxu0 %v2995_v0 }
 0x19d   : > { %2478 = vmatmul.mubr.msk.f32.gmra.mxu1 %vm243_vm0, %v3328_v53 }
 0x19e   : > { %989 = vmatprep.mubr.f32.mxu1 %v2995_v0 }
 0x19f   : > { %2497 = vmatmul.mubr.msk.f32.gmra.mxu0 %vm243_vm0, %v3317_v52 }
 0x1a0   : > { %1168 = vmatprep.mubr.f32.mxu0 %v2995_v0 }
 0x1a1   : > { %2479 = vmatmul.mubr.msk.f32.gmra.mxu1 %vm243_vm0, %v3339_v54 }
 0x1a2   : > { %995 = vmatprep.mubr.f32.mxu1 %v2995_v0 }
 0x1a3   : > { %2498 = vmatmul.mubr.msk.f32.gmra.mxu0 %vm243_vm0, %v3328_v53 }
 0x1a4   : > { %1174 = vmatprep.mubr.f32.mxu0 %v2995_v0 }
 0x1a5   : > { %2480 = vmatmul.mubr.msk.f32.gmra.mxu1 %vm243_vm0, %v3350_v55 }
 0x1a6   : > { %1001 = vmatprep.mubr.f32.mxu1 %v2995_v0 }
 0x1a7   : > { %2499 = vmatmul.mubr.msk.f32.gmra.mxu0 %vm243_vm0, %v3339_v54 }
 0x1a8   : > { %1180 = vmatprep.mubr.f32.mxu0 %v2995_v0 }
 0x1a9   : > { %2481 = vmatmul.mubr.msk.f32.gmra.mxu1 %vm243_vm0, %v3361_v56 }
 0x1aa   : > { %1007 = vmatprep.mubr.f32.mxu1 %v2995_v0 }
 0x1ab   : > { %2500 = vmatmul.mubr.msk.f32.gmra.mxu0 %vm243_vm0, %v3350_v55 }
 0x1ac   : > { %1186 = vmatprep.mubr.f32.mxu0 %v2995_v0 }
 0x1ad   : > { %2482 = vmatmul.mubr.msk.f32.gmra.mxu1 %vm243_vm0, %v3372_v57 }
 0x1ae   : > { %1013 = vmatprep.mubr.f32.mxu1 %v2995_v0 }
 0x1af   : > { %2501 = vmatmul.mubr.msk.f32.gmra.mxu0 %vm243_vm0, %v3361_v56 }
 0x1b0   : > { %1192 = vmatprep.mubr.f32.mxu0 %v2995_v0 }
 0x1b1   : > { %2483 = vmatmul.mubr.msk.f32.gmra.mxu1 %vm243_vm0, %v3383_v58 }
 0x1b2   : > { %1019 = vmatprep.mubr.f32.mxu1 %v2995_v0 }
 0x1b3   : > { %2502 = vmatmul.mubr.msk.f32.gmra.mxu0 %vm243_vm0, %v3372_v57 }
 0x1b4   : > { %1198 = vmatprep.mubr.f32.mxu0 %v2995_v0 }
 0x1b5   : > { %2484 = vmatmul.mubr.msk.f32.gmra.mxu1 %vm243_vm0, %v3394_v59 }
 0x1b6   : > { %1025 = vmatprep.mubr.f32.mxu1 %v2995_v0 }
 0x1b7   : > { %2503 = vmatmul.mubr.msk.f32.gmra.mxu0 %vm243_vm0, %v3383_v58 }
 0x1b8   : > { %1204 = vmatprep.mubr.f32.mxu0 %v2995_v0 }
 0x1b9   : > { %2485 = vmatmul.mubr.msk.f32.gmra.mxu1 %vm243_vm0, %v3405_v60 }
 0x1ba   : > { %1281 = vmatprep.mubr.f32.mxu1 %v2995_v0 }
 0x1bb   : > { %2504 = vmatmul.mubr.msk.f32.gmra.mxu0 %vm243_vm0, %v3394_v59 }
 0x1bc   : > { %1210 = vmatprep.mubr.f32.mxu0 %v2995_v0 }
 0x1bd   : > { %2506 = vmatmul.mubr.msk.f32.vlgmr.msra.gmra.mxu1 %vm243_vm0, %v3190_v26 }
 0x1be   : > { %1287 = vmatprep.mubr.f32.mxu1 %v2995_v0 }
 0x1bf   : > { %2505 = vmatmul.mubr.msk.f32.gmra.mxu0 %vm243_vm0, %v3405_v60 }
 0x1c0   : > { %1466 = vmatprep.mubr.f32.mxu0 %v2995_v0 }
 0x1c1   : > { %2507 = vmatmul.mubr.msk.f32.gmra.mxu1 %vm243_vm0, %v3202_v31 }
 0x1c2   : > { %1293 = vmatprep.mubr.f32.mxu1 %v2995_v0 }
 0x1c3   : > { %2526 = vmatmul.mubr.msk.f32.vlgmr.msra.gmra.mxu0 %vm243_vm0, %v3190_v26 }
 0x1c4   : > { %1472 = vmatprep.mubr.f32.mxu0 %v2995_v0 }
 0x1c5   : > { %2508 = vmatmul.mubr.msk.f32.gmra.mxu1 %vm243_vm0, %v3212_v36 }
 0x1c6   : > { %1299 = vmatprep.mubr.f32.mxu1 %v2995_v0 }
 0x1c7   : > { %2527 = vmatmul.mubr.msk.f32.gmra.mxu0 %vm243_vm0, %v3202_v31 }
 0x1c8   : > { %1478 = vmatprep.mubr.f32.mxu0 %v2995_v0 }
 0x1c9   : > { %2509 = vmatmul.mubr.msk.f32.gmra.mxu1 %vm243_vm0, %v3229_v43 }
 0x1ca   : > { %1305 = vmatprep.mubr.f32.mxu1 %v2995_v0 }
 0x1cb   : > { %2528 = vmatmul.mubr.msk.f32.gmra.mxu0 %vm243_vm0, %v3212_v36 }
 0x1cc   : > { %1484 = vmatprep.mubr.f32.mxu0 %v2995_v0 }
 0x1cd   : > { %2510 = vmatmul.mubr.msk.f32.gmra.mxu1 %vm243_vm0, %v3239_v45 }
 0x1ce   : > { %1311 = vmatprep.mubr.f32.mxu1 %v2995_v0 }
 0x1cf   : > { %2529 = vmatmul.mubr.msk.f32.gmra.mxu0 %vm243_vm0, %v3229_v43 }
 0x1d0   : > { %1490 = vmatprep.mubr.f32.mxu0 %v2995_v0 }
 0x1d1   : > { %2511 = vmatmul.mubr.msk.f32.gmra.mxu1 %vm243_vm0, %v3251_v46 }
 0x1d2   : > { %1317 = vmatprep.mubr.f32.mxu1 %v2995_v0 }
 0x1d3   : > { %2530 = vmatmul.mubr.msk.f32.gmra.mxu0 %vm243_vm0, %v3239_v45 }
 0x1d4   : > { %1496 = vmatprep.mubr.f32.mxu0 %v2995_v0 }
 0x1d5   : > { %2512 = vmatmul.mubr.msk.f32.gmra.mxu1 %vm243_vm0, %v3262_v47 }
 0x1d6   : > { %1323 = vmatprep.mubr.f32.mxu1 %v2995_v0 }
 0x1d7   : > { %2531 = vmatmul.mubr.msk.f32.gmra.mxu0 %vm243_vm0, %v3251_v46 }
 0x1d8   : > { %1502 = vmatprep.mubr.f32.mxu0 %v2995_v0 }
 0x1d9   : > { %2513 = vmatmul.mubr.msk.f32.gmra.mxu1 %vm243_vm0, %v3273_v48 }
 0x1da   : > { %1329 = vmatprep.mubr.f32.mxu1 %v2995_v0  ;;  %v543_v61 = vpop.f32.mrf.mxu1 }
 0x1db   : > { %2532 = vmatmul.mubr.msk.f32.gmra.mxu0 %vm243_vm0, %v3262_v47  ;;  %v1587_v62 = vmul.f32 2.0, %v543_v61 }
 0x1dc   : > { %1508 = vmatprep.mubr.f32.mxu0 %v2995_v0  ;;  %v545_v63 = vpop.f32.mrf.mxu1 }
 0x1dd   : > { %v2546_v1 = vadd.f32 -1.0, %v1587_v62  ;;  %2514 = vmatmul.mubr.msk.f32.gmra.mxu1 %vm243_vm0, %v3284_v49  ;;  %v1588_v2 = vmul.f32 2.0, %v545_v63 }
 0x1de   : > { %1335 = vmatprep.mubr.f32.mxu1 %v2995_v0  ;;  %v549_v3 = vpop.f32.mrf.mxu1 }
 0x1df   : > { %2533 = vmatmul.mubr.msk.f32.gmra.mxu0 %vm243_vm0, %v3273_v48  ;;  %2067 = vst [vmem:[%s3596_s4] sm:$0xff] %v2546_v1  ;;  %v2547_v4 = vadd.f32 -1.0, %v1588_v2  ;;  %v1589_v5 = vmul.f32 2.0, %v549_v3 }
 0x1e0   : > { %1514 = vmatprep.mubr.f32.mxu0 %v2995_v0  ;;  %v551_v6 = vpop.f32.mrf.mxu1 }
 0x1e1   : > { %2069 = vst.msk [vmem:[%s3596_s4 + $0x8] sm:$0xff] %vm2068_vm1, %v2547_v4  ;;  %v2548_v7 = vadd.f32 -1.0, %v1589_v5  ;;  %2515 = vmatmul.mubr.msk.f32.gmra.mxu1 %vm243_vm0, %v3295_v50  ;;  %v1590_v8 = vmul.f32 2.0, %v551_v6 }
 0x1e2   : > { %1341 = vmatprep.mubr.f32.mxu1 %v2995_v0  ;;  %v555_v9 = vpop.f32.mrf.mxu1 }
 0x1e3   : > { %v728_v10 = vpop.f32.mrf.mxu0  ;;  %2534 = vmatmul.mubr.msk.f32.gmra.mxu0 %vm243_vm0, %v3284_v49  ;;  %2070 = vst [vmem:[%s3596_s4 + $0x10] sm:$0xff] %v2548_v7  ;;  %v2549_v11 = vadd.f32 -1.0, %v1590_v8  ;;  %v1591_v12 = vmul.f32 2.0, %v555_v9 }
 0x1e4   : > { %v1627_v13 = vmul.f32 2.0, %v728_v10  ;;  %1520 = vmatprep.mubr.f32.mxu0 %v2995_v0  ;;  %v557_v14 = vpop.f32.mrf.mxu1 }
 0x1e5   : > { %v730_v15 = vpop.f32.mrf.mxu0  ;;  %2071 = vst.msk [vmem:[%s3596_s4 + $0x18] sm:$0xff] %vm2068_vm1, %v2549_v11  ;;  %v2550_v16 = vadd.f32 -1.0, %v1591_v12  ;;  %2516 = vmatmul.mubr.msk.f32.gmra.mxu1 %vm243_vm0, %v3306_v51  ;;  %v1592_v17 = vmul.f32 2.0, %v557_v14 }
 0x1e6   : > { %v2586_v18 = vadd.f32 -1.0, %v1627_v13  ;;  %v1628_v19 = vmul.f32 2.0, %v730_v15  ;;  %1347 = vmatprep.mubr.f32.mxu1 %v2995_v0 }
 0x1e7   : > { %v734_v20 = vpop.f32.mrf.mxu0  ;;  %2535 = vmatmul.mubr.msk.f32.gmra.mxu0 %vm243_vm0, %v3295_v50  ;;  %2072 = vst [vmem:[%s3596_s4 + $0x20] sm:$0xff] %v2550_v16  ;;  %v2551_v21 = vadd.f32 -1.0, %v1592_v17 }
 0x1e8   : > { %2108 = vst [vmem:[%s3596_s4 + $0x140] sm:$0xff] %v2586_v18  ;;  %v2587_v22 = vadd.f32 -1.0, %v1628_v19  ;;  %v1629_v23 = vmul.f32 2.0, %v734_v20  ;;  %1526 = vmatprep.mubr.f32.mxu0 %v2995_v0  ;;  %v561_v24 = vpop.f32.mrf.mxu1 }
 0x1e9   : > { %v736_v25 = vpop.f32.mrf.mxu0  ;;  %2073 = vst.msk [vmem:[%s3596_s4 + $0x28] sm:$0xff] %vm2068_vm1, %v2551_v21  ;;  %v1593_v26 = vmul.f32 2.0, %v561_v24  ;;  %2517 = vmatmul.mubr.msk.f32.gmra.mxu1 %vm243_vm0, %v3317_v52 }
 0x1ea   : > { %2109 = vst.msk [vmem:[%s3596_s4 + $0x148] sm:$0xff] %vm2068_vm1, %v2587_v22  ;;  %v2588_v27 = vadd.f32 -1.0, %v1629_v23  ;;  %v1630_v28 = vmul.f32 2.0, %v736_v25  ;;  %v563_v29 = vpop.f32.mrf.mxu1  ;;  %1353 = vmatprep.mubr.f32.mxu1 %v2995_v0 }
 0x1eb   : > { %v740_v30 = vpop.f32.mrf.mxu0  ;;  %2536 = vmatmul.mubr.msk.f32.gmra.mxu0 %vm243_vm0, %v3306_v51  ;;  %v2552_v31 = vadd.f32 -1.0, %v1593_v26  ;;  %v1594_v32 = vmul.f32 2.0, %v563_v29 }
 0x1ec   : > { %2110 = vst [vmem:[%s3596_s4 + $0x150] sm:$0xff] %v2588_v27  ;;  %v2589_v33 = vadd.f32 -1.0, %v1630_v28  ;;  %v1631_v34 = vmul.f32 2.0, %v740_v30  ;;  %1532 = vmatprep.mubr.f32.mxu0 %v2995_v0  ;;  %v567_v35 = vpop.f32.mrf.mxu1 }
 0x1ed   : > { %v742_v36 = vpop.f32.mrf.mxu0  ;;  %2074 = vst [vmem:[%s3596_s4 + $0x30] sm:$0xff] %v2552_v31  ;;  %v2553_v37 = vadd.f32 -1.0, %v1594_v32  ;;  %v1595_v38 = vmul.f32 2.0, %v567_v35  ;;  %2518 = vmatmul.mubr.msk.f32.gmra.mxu1 %vm243_vm0, %v3328_v53 }
 0x1ee   : > { %2111 = vst.msk [vmem:[%s3596_s4 + $0x158] sm:$0xff] %vm2068_vm1, %v2589_v33  ;;  %v2590_v39 = vadd.f32 -1.0, %v1631_v34  ;;  %v1632_v40 = vmul.f32 2.0, %v742_v36  ;;  %v569_v41 = vpop.f32.mrf.mxu1  ;;  %1359 = vmatprep.mubr.f32.mxu1 %v2995_v0 }
 0x1ef   : > { %v746_v42 = vpop.f32.mrf.mxu0  ;;  %2537 = vmatmul.mubr.msk.f32.gmra.mxu0 %vm243_vm0, %v3317_v52  ;;  %2075 = vst.msk [vmem:[%s3596_s4 + $0x38] sm:$0xff] %vm2068_vm1, %v2553_v37  ;;  %v2554_v43 = vadd.f32 -1.0, %v1595_v38  ;;  %v1596_v44 = vmul.f32 2.0, %v569_v41 }
 0x1f0   : > { %2112 = vst [vmem:[%s3596_s4 + $0x160] sm:$0xff] %v2590_v39  ;;  %v2591_v45 = vadd.f32 -1.0, %v1632_v40  ;;  %v1633_v46 = vmul.f32 2.0, %v746_v42  ;;  %1538 = vmatprep.mubr.f32.mxu0 %v2995_v0  ;;  %v573_v47 = vpop.f32.mrf.mxu1 }
 0x1f1   : > { %v748_v48 = vpop.f32.mrf.mxu0  ;;  %2076 = vst [vmem:[%s3596_s4 + $0x40] sm:$0xff] %v2554_v43  ;;  %v2555_v49 = vadd.f32 -1.0, %v1596_v44  ;;  %v1597_v50 = vmul.f32 2.0, %v573_v47  ;;  %2519 = vmatmul.mubr.msk.f32.gmra.mxu1 %vm243_vm0, %v3339_v54 }
 0x1f2   : > { %2113 = vst.msk [vmem:[%s3596_s4 + $0x168] sm:$0xff] %vm2068_vm1, %v2591_v45  ;;  %v2592_v51 = vadd.f32 -1.0, %v1633_v46  ;;  %v1634_v52 = vmul.f32 2.0, %v748_v48  ;;  %v575_v61 = vpop.f32.mrf.mxu1  ;;  %1365 = vmatprep.mubr.f32.mxu1 %v2995_v0 }
 0x1f3   : > { %v752_v62 = vpop.f32.mrf.mxu0  ;;  %2538 = vmatmul.mubr.msk.f32.gmra.mxu0 %vm243_vm0, %v3328_v53  ;;  %2077 = vst.msk [vmem:[%s3596_s4 + $0x48] sm:$0xff] %vm2068_vm1, %v2555_v49  ;;  %v2556_v63 = vadd.f32 -1.0, %v1597_v50  ;;  %v1598_v1 = vmul.f32 2.0, %v575_v61 }
 0x1f4   : > { %2114 = vst [vmem:[%s3596_s4 + $0x170] sm:$0xff] %v2592_v51  ;;  %v2593_v2 = vadd.f32 -1.0, %v1634_v52  ;;  %v1635_v3 = vmul.f32 2.0, %v752_v62  ;;  %1544 = vmatprep.mubr.f32.mxu0 %v2995_v0  ;;  %v579_v4 = vpop.f32.mrf.mxu1 }
 0x1f5   : > { %v754_v5 = vpop.f32.mrf.mxu0  ;;  %2078 = vst [vmem:[%s3596_s4 + $0x50] sm:$0xff] %v2556_v63  ;;  %v2557_v6 = vadd.f32 -1.0, %v1598_v1  ;;  %v1599_v7 = vmul.f32 2.0, %v579_v4  ;;  %2520 = vmatmul.mubr.msk.f32.gmra.mxu1 %vm243_vm0, %v3350_v55 }
 0x1f6   : > { %2115 = vst.msk [vmem:[%s3596_s4 + $0x178] sm:$0xff] %vm2068_vm1, %v2593_v2  ;;  %v2594_v53 = vadd.f32 -1.0, %v1635_v3  ;;  %v1636_v8 = vmul.f32 2.0, %v754_v5  ;;  %v581_v9 = vpop.f32.mrf.mxu1  ;;  %1371 = vmatprep.mubr.f32.mxu1 %v2995_v0 }
 0x1f7   : > { %v758_v10 = vpop.f32.mrf.mxu0  ;;  %2539 = vmatmul.mubr.msk.f32.gmra.mxu0 %vm243_vm0, %v3339_v54  ;;  %2079 = vst.msk [vmem:[%s3596_s4 + $0x58] sm:$0xff] %vm2068_vm1, %v2557_v6  ;;  %v2558_v11 = vadd.f32 -1.0, %v1599_v7  ;;  %v1600_v12 = vmul.f32 2.0, %v581_v9 }
 0x1f8   : > { %2116 = vst [vmem:[%s3596_s4 + $0x180] sm:$0xff] %v2594_v53  ;;  %v2595_v13 = vadd.f32 -1.0, %v1636_v8  ;;  %v1637_v14 = vmul.f32 2.0, %v758_v10  ;;  %1550 = vmatprep.mubr.f32.mxu0 %v2995_v0  ;;  %v585_v15 = vpop.f32.mrf.mxu1 }
 0x1f9   : > { %v760_v16 = vpop.f32.mrf.mxu0  ;;  %2080 = vst [vmem:[%s3596_s4 + $0x60] sm:$0xff] %v2558_v11  ;;  %v2559_v17 = vadd.f32 -1.0, %v1600_v12  ;;  %v1601_v18 = vmul.f32 2.0, %v585_v15  ;;  %2521 = vmatmul.mubr.msk.f32.gmra.mxu1 %vm243_vm0, %v3361_v56 }
 0x1fa   : > { %2117 = vst.msk [vmem:[%s3596_s4 + $0x188] sm:$0xff] %vm2068_vm1, %v2595_v13  ;;  %v2596_v54 = vadd.f32 -1.0, %v1637_v14  ;;  %v1638_v19 = vmul.f32 2.0, %v760_v16  ;;  %v587_v20 = vpop.f32.mrf.mxu1  ;;  %1377 = vmatprep.mubr.f32.mxu1 %v2995_v0 }
 0x1fb   : > { %v764_v21 = vpop.f32.mrf.mxu0  ;;  %2540 = vmatmul.mubr.msk.f32.gmra.mxu0 %vm243_vm0, %v3350_v55  ;;  %2081 = vst.msk [vmem:[%s3596_s4 + $0x68] sm:$0xff] %vm2068_vm1, %v2559_v17  ;;  %v2560_v22 = vadd.f32 -1.0, %v1601_v18  ;;  %v1602_v23 = vmul.f32 2.0, %v587_v20 }
 0x1fc   : > { %2118 = vst [vmem:[%s3596_s4 + $0x190] sm:$0xff] %v2596_v54  ;;  %v2597_v24 = vadd.f32 -1.0, %v1638_v19  ;;  %v1639_v25 = vmul.f32 2.0, %v764_v21  ;;  %1556 = vmatprep.mubr.f32.mxu0 %v2995_v0  ;;  %v591_v26 = vpop.f32.mrf.mxu1 }
 0x1fd   : > { %v766_v27 = vpop.f32.mrf.mxu0  ;;  %2082 = vst [vmem:[%s3596_s4 + $0x70] sm:$0xff] %v2560_v22  ;;  %v2561_v28 = vadd.f32 -1.0, %v1602_v23  ;;  %v1603_v29 = vmul.f32 2.0, %v591_v26  ;;  %2522 = vmatmul.mubr.msk.f32.gmra.mxu1 %vm243_vm0, %v3372_v57 }
 0x1fe   : > { %2119 = vst.msk [vmem:[%s3596_s4 + $0x198] sm:$0xff] %vm2068_vm1, %v2597_v24  ;;  %v2598_v55 = vadd.f32 -1.0, %v1639_v25  ;;  %v1640_v30 = vmul.f32 2.0, %v766_v27  ;;  %v593_v31 = vpop.f32.mrf.mxu1  ;;  %1383 = vmatprep.mubr.f32.mxu1 %v2995_v0 }
 0x1ff   : > { %v770_v32 = vpop.f32.mrf.mxu0  ;;  %2541 = vmatmul.mubr.msk.f32.gmra.mxu0 %vm243_vm0, %v3361_v56  ;;  %2083 = vst.msk [vmem:[%s3596_s4 + $0x78] sm:$0xff] %vm2068_vm1, %v2561_v28  ;;  %v2562_v33 = vadd.f32 -1.0, %v1603_v29  ;;  %v1604_v34 = vmul.f32 2.0, %v593_v31 }
 0x200   : > { %2120 = vst [vmem:[%s3596_s4 + $0x1a0] sm:$0xff] %v2598_v55  ;;  %v2599_v35 = vadd.f32 -1.0, %v1640_v30  ;;  %v1641_v36 = vmul.f32 2.0, %v770_v32  ;;  %1562 = vmatprep.mubr.f32.mxu0 %v2995_v0  ;;  %v597_v37 = vpop.f32.mrf.mxu1 }
 0x201   : > { %v772_v38 = vpop.f32.mrf.mxu0  ;;  %2084 = vst [vmem:[%s3596_s4 + $0x80] sm:$0xff] %v2562_v33  ;;  %v2563_v39 = vadd.f32 -1.0, %v1604_v34  ;;  %v1605_v40 = vmul.f32 2.0, %v597_v37  ;;  %2523 = vmatmul.mubr.msk.f32.gmra.mxu1 %vm243_vm0, %v3383_v58 }
 0x202   : > { %2121 = vst.msk [vmem:[%s3596_s4 + $0x1a8] sm:$0xff] %vm2068_vm1, %v2599_v35  ;;  %v2600_v56 = vadd.f32 -1.0, %v1641_v36  ;;  %v1642_v41 = vmul.f32 2.0, %v772_v38  ;;  %v599_v42 = vpop.f32.mrf.mxu1  ;;  %1389 = vmatprep.mubr.f32.mxu1 %v2995_v0 }
 0x203   : > { %v776_v43 = vpop.f32.mrf.mxu0  ;;  %2542 = vmatmul.mubr.msk.f32.gmra.mxu0 %vm243_vm0, %v3372_v57  ;;  %2085 = vst.msk [vmem:[%s3596_s4 + $0x88] sm:$0xff] %vm2068_vm1, %v2563_v39  ;;  %v2564_v44 = vadd.f32 -1.0, %v1605_v40  ;;  %v1606_v45 = vmul.f32 2.0, %v599_v42 }
 0x204   : > { %2122 = vst [vmem:[%s3596_s4 + $0x1b0] sm:$0xff] %v2600_v56  ;;  %v2601_v46 = vadd.f32 -1.0, %v1642_v41  ;;  %v1643_v47 = vmul.f32 2.0, %v776_v43  ;;  %1568 = vmatprep.mubr.f32.mxu0 %v2995_v0  ;;  %v603_v48 = vpop.f32.mrf.mxu1 }
 0x205   : > { %v778_v49 = vpop.f32.mrf.mxu0  ;;  %2086 = vst [vmem:[%s3596_s4 + $0x90] sm:$0xff] %v2564_v44  ;;  %v2565_v50 = vadd.f32 -1.0, %v1606_v45  ;;  %v1607_v51 = vmul.f32 2.0, %v603_v48  ;;  %2524 = vmatmul.mubr.msk.f32.gmra.mxu1 %vm243_vm0, %v3394_v59 }
 0x206   : > { %2123 = vst.msk [vmem:[%s3596_s4 + $0x1b8] sm:$0xff] %vm2068_vm1, %v2601_v46  ;;  %v2602_v57 = vadd.f32 -1.0, %v1643_v47  ;;  %v1644_v52 = vmul.f32 2.0, %v778_v49  ;;  %v605_v61 = vpop.f32.mrf.mxu1  ;;  %1395 = vmatprep.mubr.f32.mxu1 %v2995_v0 }
 0x207   : > { %v782_v62 = vpop.f32.mrf.mxu0  ;;  %2543 = vmatmul.mubr.msk.f32.gmra.mxu0 %vm243_vm0, %v3383_v58  ;;  %2087 = vst.msk [vmem:[%s3596_s4 + $0x98] sm:$0xff] %vm2068_vm1, %v2565_v50  ;;  %v2566_v63 = vadd.f32 -1.0, %v1607_v51  ;;  %v1608_v1 = vmul.f32 2.0, %v605_v61 }
 0x208   : > { %2124 = vst [vmem:[%s3596_s4 + $0x1c0] sm:$0xff] %v2602_v57  ;;  %v2603_v2 = vadd.f32 -1.0, %v1644_v52  ;;  %v1645_v3 = vmul.f32 2.0, %v782_v62  ;;  %1574 = vmatprep.mubr.f32.mxu0 %v2995_v0  ;;  %v609_v4 = vpop.f32.mrf.mxu1 }
 0x209   : > { %v784_v5 = vpop.f32.mrf.mxu0  ;;  %2088 = vst [vmem:[%s3596_s4 + $0xa0] sm:$0xff] %v2566_v63  ;;  %v2567_v6 = vadd.f32 -1.0, %v1608_v1  ;;  %v1609_v7 = vmul.f32 2.0, %v609_v4  ;;  %2525 = vmatmul.mubr.msk.f32.gmra.mxu1 %vm243_vm0, %v3405_v60 }
 0x20a   : > { %2125 = vst.msk [vmem:[%s3596_s4 + $0x1c8] sm:$0xff] %vm2068_vm1, %v2603_v2  ;;  %v2604_v58 = vadd.f32 -1.0, %v1645_v3  ;;  %v1646_v53 = vmul.f32 2.0, %v784_v5  ;;  %v611_v8 = vpop.f32.mrf.mxu1 }
 0x20b   : > { %v788_v9 = vpop.f32.mrf.mxu0  ;;  %2544 = vmatmul.mubr.msk.f32.gmra.mxu0 %vm243_vm0, %v3394_v59  ;;  %2089 = vst.msk [vmem:[%s3596_s4 + $0xa8] sm:$0xff] %vm2068_vm1, %v2567_v6  ;;  %v2568_v10 = vadd.f32 -1.0, %v1609_v7  ;;  %v1610_v11 = vmul.f32 2.0, %v611_v8 }
 0x20c   : > { %2126 = vst [vmem:[%s3596_s4 + $0x1d0] sm:$0xff] %v2604_v58  ;;  %v2605_v12 = vadd.f32 -1.0, %v1646_v53  ;;  %v1647_v13 = vmul.f32 2.0, %v788_v9  ;;  %1580 = vmatprep.mubr.f32.mxu0 %v2995_v0  ;;  %v615_v14 = vpop.f32.mrf.mxu1 }
 0x20d   : > { %v790_v15 = vpop.f32.mrf.mxu0  ;;  %2090 = vst [vmem:[%s3596_s4 + $0xb0] sm:$0xff] %v2568_v10  ;;  %v2569_v16 = vadd.f32 -1.0, %v1610_v11  ;;  %v1611_v17 = vmul.f32 2.0, %v615_v14 }
 0x20e   : > { %2127 = vst.msk [vmem:[%s3596_s4 + $0x1d8] sm:$0xff] %vm2068_vm1, %v2605_v12  ;;  %v2606_v59 = vadd.f32 -1.0, %v1647_v13  ;;  %v1648_v18 = vmul.f32 2.0, %v790_v15  ;;  %v617_v54 = vpop.f32.mrf.mxu1 }
 0x20f   : > { %v794_v19 = vpop.f32.mrf.mxu0  ;;  %2545 = vmatmul.mubr.msk.f32.gmra.mxu0 %vm243_vm0, %v3405_v60  ;;  %2091 = vst.msk [vmem:[%s3596_s4 + $0xb8] sm:$0xff] %vm2068_vm1, %v2569_v16  ;;  %v2570_v0 = vadd.f32 -1.0, %v1611_v17  ;;  %v1612_v20 = vmul.f32 2.0, %v617_v54 }
 0x210   : > { %2128 = vst [vmem:[%s3596_s4 + $0x1e0] sm:$0xff] %v2606_v59  ;;  %v2607_v21 = vadd.f32 -1.0, %v1648_v18  ;;  %v1649_v22 = vmul.f32 2.0, %v794_v19  ;;  %v621_v23 = vpop.f32.mrf.mxu1 }
 0x211   : > { %v796_v24 = vpop.f32.mrf.mxu0  ;;  %2092 = vst [vmem:[%s3596_s4 + $0xc0] sm:$0xff] %v2570_v0  ;;  %v2571_v25 = vadd.f32 -1.0, %v1612_v20  ;;  %v1613_v26 = vmul.f32 2.0, %v621_v23 }
 0x212   : > { %2129 = vst.msk [vmem:[%s3596_s4 + $0x1e8] sm:$0xff] %vm2068_vm1, %v2607_v21  ;;  %v2608_v27 = vadd.f32 -1.0, %v1649_v22  ;;  %v1650_v60 = vmul.f32 2.0, %v796_v24  ;;  %v623_v28 = vpop.f32.mrf.mxu1 }
 0x213   : > { %v800_v29 = vpop.f32.mrf.mxu0  ;;  %2093 = vst.msk [vmem:[%s3596_s4 + $0xc8] sm:$0xff] %vm2068_vm1, %v2571_v25  ;;  %v2572_v55 = vadd.f32 -1.0, %v1613_v26  ;;  %v1614_v30 = vmul.f32 2.0, %v623_v28 }
 0x214   : > { %2130 = vst [vmem:[%s3596_s4 + $0x1f0] sm:$0xff] %v2608_v27  ;;  %v2609_v31 = vadd.f32 -1.0, %v1650_v60  ;;  %v1651_v32 = vmul.f32 2.0, %v800_v29  ;;  %v627_v33 = vpop.f32.mrf.mxu1 }
 0x215   : > { %v802_v34 = vpop.f32.mrf.mxu0  ;;  %2094 = vst [vmem:[%s3596_s4 + $0xd0] sm:$0xff] %v2572_v55  ;;  %v2573_v35 = vadd.f32 -1.0, %v1614_v30  ;;  %v1615_v36 = vmul.f32 2.0, %v627_v33 }
 0x216   : > { %2131 = vst.msk [vmem:[%s3596_s4 + $0x1f8] sm:$0xff] %vm2068_vm1, %v2609_v31  ;;  %v2610_v37 = vadd.f32 -1.0, %v1651_v32  ;;  %v1652_v38 = vmul.f32 2.0, %v802_v34  ;;  %v629_v39 = vpop.f32.mrf.mxu1 }
 0x217   : > { %v806_v40 = vpop.f32.mrf.mxu0  ;;  %2095 = vst.msk [vmem:[%s3596_s4 + $0xd8] sm:$0xff] %vm2068_vm1, %v2573_v35  ;;  %v2574_v56 = vadd.f32 -1.0, %v1615_v36  ;;  %v1616_v41 = vmul.f32 2.0, %v629_v39 }
 0x218   : > { %2132 = vst [vmem:[%s3596_s4 + $0x200] sm:$0xff] %v2610_v37  ;;  %v2611_v42 = vadd.f32 -1.0, %v1652_v38  ;;  %v1653_v43 = vmul.f32 2.0, %v806_v40  ;;  %v633_v44 = vpop.f32.mrf.mxu1 }
 0x219   : > { %v808_v45 = vpop.f32.mrf.mxu0  ;;  %2096 = vst [vmem:[%s3596_s4 + $0xe0] sm:$0xff] %v2574_v56  ;;  %v2575_v46 = vadd.f32 -1.0, %v1616_v41  ;;  %v1617_v47 = vmul.f32 2.0, %v633_v44 }
 0x21a   : > { %2133 = vst.msk [vmem:[%s3596_s4 + $0x208] sm:$0xff] %vm2068_vm1, %v2611_v42  ;;  %v2612_v48 = vadd.f32 -1.0, %v1653_v43  ;;  %v1654_v49 = vmul.f32 2.0, %v808_v45  ;;  %v635_v50 = vpop.f32.mrf.mxu1 }
 0x21b   : > { %v812_v51 = vpop.f32.mrf.mxu0  ;;  %2097 = vst.msk [vmem:[%s3596_s4 + $0xe8] sm:$0xff] %vm2068_vm1, %v2575_v46  ;;  %v2576_v57 = vadd.f32 -1.0, %v1617_v47  ;;  %v1618_v52 = vmul.f32 2.0, %v635_v50 }
 0x21c   : > { %2134 = vst [vmem:[%s3596_s4 + $0x210] sm:$0xff] %v2612_v48  ;;  %v2613_v61 = vadd.f32 -1.0, %v1654_v49  ;;  %v1655_v62 = vmul.f32 2.0, %v812_v51  ;;  %v639_v63 = vpop.f32.mrf.mxu1 }
 0x21d   : > { %v814_v1 = vpop.f32.mrf.mxu0  ;;  %2098 = vst [vmem:[%s3596_s4 + $0xf0] sm:$0xff] %v2576_v57  ;;  %v2577_v2 = vadd.f32 -1.0, %v1618_v52  ;;  %v1619_v3 = vmul.f32 2.0, %v639_v63 }
 0x21e   : > { %2135 = vst.msk [vmem:[%s3596_s4 + $0x218] sm:$0xff] %vm2068_vm1, %v2613_v61  ;;  %v2614_v4 = vadd.f32 -1.0, %v1655_v62  ;;  %v1656_v5 = vmul.f32 2.0, %v814_v1  ;;  %v641_v6 = vpop.f32.mrf.mxu1 }
 0x21f   : > { %v818_v7 = vpop.f32.mrf.mxu0  ;;  %2099 = vst.msk [vmem:[%s3596_s4 + $0xf8] sm:$0xff] %vm2068_vm1, %v2577_v2  ;;  %v2578_v58 = vadd.f32 -1.0, %v1619_v3  ;;  %v1620_v53 = vmul.f32 2.0, %v641_v6 }
 0x220   : > { %2136 = vst [vmem:[%s3596_s4 + $0x220] sm:$0xff] %v2614_v4  ;;  %v2615_v8 = vadd.f32 -1.0, %v1656_v5  ;;  %v1657_v9 = vmul.f32 2.0, %v818_v7  ;;  %v645_v10 = vpop.f32.mrf.mxu1 }
 0x221   : > { %v820_v11 = vpop.f32.mrf.mxu0  ;;  %2100 = vst [vmem:[%s3596_s4 + $0x100] sm:$0xff] %v2578_v58  ;;  %v2579_v12 = vadd.f32 -1.0, %v1620_v53  ;;  %v1621_v13 = vmul.f32 2.0, %v645_v10 }
 0x222   : > { %2137 = vst.msk [vmem:[%s3596_s4 + $0x228] sm:$0xff] %vm2068_vm1, %v2615_v8  ;;  %v2616_v14 = vadd.f32 -1.0, %v1657_v9  ;;  %v1658_v15 = vmul.f32 2.0, %v820_v11  ;;  %v647_v16 = vpop.f32.mrf.mxu1 }
 0x223   : > { %v824_v17 = vpop.f32.mrf.mxu0  ;;  %2101 = vst.msk [vmem:[%s3596_s4 + $0x108] sm:$0xff] %vm2068_vm1, %v2579_v12  ;;  %v2580_v59 = vadd.f32 -1.0, %v1621_v13  ;;  %v1622_v18 = vmul.f32 2.0, %v647_v16 }
 0x224   : > { %2138 = vst [vmem:[%s3596_s4 + $0x230] sm:$0xff] %v2616_v14  ;;  %v2617_v54 = vadd.f32 -1.0, %v1658_v15  ;;  %v1659_v19 = vmul.f32 2.0, %v824_v17  ;;  %v651_v0 = vpop.f32.mrf.mxu1 }
 0x225   : > { %v826_v20 = vpop.f32.mrf.mxu0  ;;  %2102 = vst [vmem:[%s3596_s4 + $0x110] sm:$0xff] %v2580_v59  ;;  %v2581_v21 = vadd.f32 -1.0, %v1622_v18  ;;  %v1623_v22 = vmul.f32 2.0, %v651_v0 }
 0x226   : > { %2139 = vst.msk [vmem:[%s3596_s4 + $0x238] sm:$0xff] %vm2068_vm1, %v2617_v54  ;;  %v2618_v23 = vadd.f32 -1.0, %v1659_v19  ;;  %v1660_v24 = vmul.f32 2.0, %v826_v20  ;;  %v653_v25 = vpop.f32.mrf.mxu1 }
 0x227   : > { %v830_v26 = vpop.f32.mrf.mxu0  ;;  %2103 = vst.msk [vmem:[%s3596_s4 + $0x118] sm:$0xff] %vm2068_vm1, %v2581_v21  ;;  %v2582_v27 = vadd.f32 -1.0, %v1623_v22  ;;  %v1624_v60 = vmul.f32 2.0, %v653_v25 }
 0x228   : > { %2140 = vst [vmem:[%s3596_s4 + $0x240] sm:$0xff] %v2618_v23  ;;  %v2619_v28 = vadd.f32 -1.0, %v1660_v24  ;;  %v1661_v29 = vmul.f32 2.0, %v830_v26  ;;  %v657_v55 = vpop.f32.mrf.mxu1 }
 0x229   : > { %v832_v30 = vpop.f32.mrf.mxu0  ;;  %2104 = vst [vmem:[%s3596_s4 + $0x120] sm:$0xff] %v2582_v27  ;;  %v2583_v31 = vadd.f32 -1.0, %v1624_v60  ;;  %v1625_v32 = vmul.f32 2.0, %v657_v55 }
 0x22a   : > { %2141 = vst.msk [vmem:[%s3596_s4 + $0x248] sm:$0xff] %vm2068_vm1, %v2619_v28  ;;  %v2620_v33 = vadd.f32 -1.0, %v1661_v29  ;;  %v1662_v34 = vmul.f32 2.0, %v832_v30  ;;  %v659_v35 = vpop.f32.mrf.mxu1 }
 0x22b   : > { %v836_v36 = vpop.f32.mrf.mxu0  ;;  %2105 = vst.msk [vmem:[%s3596_s4 + $0x128] sm:$0xff] %vm2068_vm1, %v2583_v31  ;;  %v2584_v37 = vadd.f32 -1.0, %v1625_v32  ;;  %v1626_v38 = vmul.f32 2.0, %v659_v35 }
 0x22c   : > { %2142 = vst [vmem:[%s3596_s4 + $0x250] sm:$0xff] %v2620_v33  ;;  %v2621_v39 = vadd.f32 -1.0, %v1662_v34  ;;  %v1663_v40 = vmul.f32 2.0, %v836_v36  ;;  %v913_v56 = vpop.f32.mrf.mxu1 }
 0x22d   : > { %v838_v41 = vpop.f32.mrf.mxu0  ;;  %2106 = vst [vmem:[%s3596_s4 + $0x130] sm:$0xff] %v2584_v37  ;;  %v2585_v42 = vadd.f32 -1.0, %v1626_v38  ;;  %v1667_v43 = vmul.f32 2.0, %v913_v56 }
 0x22e   : > { %2143 = vst.msk [vmem:[%s3596_s4 + $0x258] sm:$0xff] %vm2068_vm1, %v2621_v39  ;;  %v2622_v44 = vadd.f32 -1.0, %v1663_v40  ;;  %v1664_v45 = vmul.f32 2.0, %v838_v41  ;;  %v915_v46 = vpop.f32.mrf.mxu1 }
 0x22f   : > { %v842_v47 = vpop.f32.mrf.mxu0  ;;  %2107 = vst.msk [vmem:[%s3596_s4 + $0x138] sm:$0xff] %vm2068_vm1, %v2585_v42  ;;  %v2626_v48 = vadd.f32 -1.0, %v1667_v43  ;;  %v1668_v49 = vmul.f32 2.0, %v915_v46 }
 0x230   : > { %2144 = vst [vmem:[%s3596_s4 + $0x260] sm:$0xff] %v2622_v44  ;;  %v2623_v50 = vadd.f32 -1.0, %v1664_v45  ;;  %v1665_v51 = vmul.f32 2.0, %v842_v47  ;;  %v919_v57 = vpop.f32.mrf.mxu1 }
 0x231   : > { %v844_v52 = vpop.f32.mrf.mxu0  ;;  %2148 = vst [vmem:[%s3596_s4 + $0x280] sm:$0xff] %v2626_v48  ;;  %v2627_v61 = vadd.f32 -1.0, %v1668_v49  ;;  %v1669_v62 = vmul.f32 2.0, %v919_v57 }
 0x232   : > { %2145 = vst.msk [vmem:[%s3596_s4 + $0x268] sm:$0xff] %vm2068_vm1, %v2623_v50  ;;  %v2624_v63 = vadd.f32 -1.0, %v1665_v51  ;;  %v1666_v1 = vmul.f32 2.0, %v844_v52  ;;  %v921_v2 = vpop.f32.mrf.mxu1 }
 0x233   : > { %v1098_v3 = vpop.f32.mrf.mxu0  ;;  %2149 = vst.msk [vmem:[%s3596_s4 + $0x288] sm:$0xff] %vm2068_vm1, %v2627_v61  ;;  %v2628_v4 = vadd.f32 -1.0, %v1669_v62  ;;  %v1670_v5 = vmul.f32 2.0, %v921_v2 }
 0x234   : > { %2146 = vst [vmem:[%s3596_s4 + $0x270] sm:$0xff] %v2624_v63  ;;  %v2625_v6 = vadd.f32 -1.0, %v1666_v1  ;;  %v1707_v7 = vmul.f32 2.0, %v1098_v3 }
 0x235   : > { %v1100_v58 = vpop.f32.mrf.mxu0  ;;  %2150 = vst [vmem:[%s3596_s4 + $0x290] sm:$0xff] %v2628_v4  ;;  %v2629_v53 = vadd.f32 -1.0, %v1670_v5  ;;  %v925_v8 = vpop.f32.mrf.mxu1 }
 0x236   : > { %2147 = vst.msk [vmem:[%s3596_s4 + $0x278] sm:$0xff] %vm2068_vm1, %v2625_v6  ;;  %v2666_v9 = vadd.f32 -1.0, %v1707_v7  ;;  %v1708_v10 = vmul.f32 2.0, %v1100_v58  ;;  %v1671_v11 = vmul.f32 2.0, %v925_v8 }
 0x237   : > { %v1104_v12 = vpop.f32.mrf.mxu0  ;;  %2151 = vst.msk [vmem:[%s3596_s4 + $0x298] sm:$0xff] %vm2068_vm1, %v2629_v53  ;;  %v927_v13 = vpop.f32.mrf.mxu1 }
 0x238   : > { %2188 = vst [vmem:[%s3596_s4 + $0x3c0] sm:$0xff] %v2666_v9  ;;  %v2667_v14 = vadd.f32 -1.0, %v1708_v10  ;;  %v1709_v15 = vmul.f32 2.0, %v1104_v12  ;;  %v2630_v16 = vadd.f32 -1.0, %v1671_v11  ;;  %v1672_v17 = vmul.f32 2.0, %v927_v13 }
 0x239   : > { %v1106_v59 = vpop.f32.mrf.mxu0  ;;  %v931_v18 = vpop.f32.mrf.mxu1 }
 0x23a   : > { %2189 = vst.msk [vmem:[%s3596_s4 + $0x3c8] sm:$0xff] %vm2068_vm1, %v2667_v14  ;;  %v2668_v54 = vadd.f32 -1.0, %v1709_v15  ;;  %v1710_v19 = vmul.f32 2.0, %v1106_v59  ;;  %2152 = vst [vmem:[%s3596_s4 + $0x2a0] sm:$0xff] %v2630_v16  ;;  %v2631_v0 = vadd.f32 -1.0, %v1672_v17  ;;  %v1673_v20 = vmul.f32 2.0, %v931_v18 }
 0x23b   : > { %v1110_v21 = vpop.f32.mrf.mxu0  ;;  %v933_v22 = vpop.f32.mrf.mxu1 }
 0x23c   : > { %2190 = vst [vmem:[%s3596_s4 + $0x3d0] sm:$0xff] %v2668_v54  ;;  %v2669_v23 = vadd.f32 -1.0, %v1710_v19  ;;  %v1711_v24 = vmul.f32 2.0, %v1110_v21  ;;  %2153 = vst.msk [vmem:[%s3596_s4 + $0x2a8] sm:$0xff] %vm2068_vm1, %v2631_v0  ;;  %v2632_v25 = vadd.f32 -1.0, %v1673_v20  ;;  %v1674_v26 = vmul.f32 2.0, %v933_v22 }
 0x23d   : > { %v1112_v27 = vpop.f32.mrf.mxu0  ;;  %v937_v60 = vpop.f32.mrf.mxu1 }
 0x23e   : > { %2191 = vst.msk [vmem:[%s3596_s4 + $0x3d8] sm:$0xff] %vm2068_vm1, %v2669_v23  ;;  %v2670_v28 = vadd.f32 -1.0, %v1711_v24  ;;  %v1712_v29 = vmul.f32 2.0, %v1112_v27  ;;  %2154 = vst [vmem:[%s3596_s4 + $0x2b0] sm:$0xff] %v2632_v25  ;;  %v2633_v55 = vadd.f32 -1.0, %v1674_v26  ;;  %v1675_v30 = vmul.f32 2.0, %v937_v60 }
 0x23f   : > { %v1116_v31 = vpop.f32.mrf.mxu0  ;;  %v939_v32 = vpop.f32.mrf.mxu1 }
 0x240   : > { %2192 = vst [vmem:[%s3596_s4 + $0x3e0] sm:$0xff] %v2670_v28  ;;  %v2671_v33 = vadd.f32 -1.0, %v1712_v29  ;;  %v1713_v34 = vmul.f32 2.0, %v1116_v31  ;;  %2155 = vst.msk [vmem:[%s3596_s4 + $0x2b8] sm:$0xff] %vm2068_vm1, %v2633_v55  ;;  %v2634_v35 = vadd.f32 -1.0, %v1675_v30  ;;  %v1676_v36 = vmul.f32 2.0, %v939_v32 }
 0x241   : > { %v1118_v37 = vpop.f32.mrf.mxu0  ;;  %v943_v38 = vpop.f32.mrf.mxu1 }
 0x242   : > { %2193 = vst.msk [vmem:[%s3596_s4 + $0x3e8] sm:$0xff] %vm2068_vm1, %v2671_v33  ;;  %v2672_v39 = vadd.f32 -1.0, %v1713_v34  ;;  %v1714_v40 = vmul.f32 2.0, %v1118_v37  ;;  %2156 = vst [vmem:[%s3596_s4 + $0x2c0] sm:$0xff] %v2634_v35  ;;  %v2635_v56 = vadd.f32 -1.0, %v1676_v36  ;;  %v1677_v41 = vmul.f32 2.0, %v943_v38 }
 0x243   : > { %v1122_v42 = vpop.f32.mrf.mxu0  ;;  %v945_v43 = vpop.f32.mrf.mxu1 }
 0x244   : > { %2194 = vst [vmem:[%s3596_s4 + $0x3f0] sm:$0xff] %v2672_v39  ;;  %v2673_v44 = vadd.f32 -1.0, %v1714_v40  ;;  %v1715_v45 = vmul.f32 2.0, %v1122_v42  ;;  %2157 = vst.msk [vmem:[%s3596_s4 + $0x2c8] sm:$0xff] %vm2068_vm1, %v2635_v56  ;;  %v2636_v46 = vadd.f32 -1.0, %v1677_v41  ;;  %v1678_v47 = vmul.f32 2.0, %v945_v43 }
 0x245   : > { %v1124_v48 = vpop.f32.mrf.mxu0  ;;  %v949_v49 = vpop.f32.mrf.mxu1 }
 0x246   : > { %2195 = vst.msk [vmem:[%s3596_s4 + $0x3f8] sm:$0xff] %vm2068_vm1, %v2673_v44  ;;  %v2674_v50 = vadd.f32 -1.0, %v1715_v45  ;;  %v1716_v51 = vmul.f32 2.0, %v1124_v48  ;;  %2158 = vst [vmem:[%s3596_s4 + $0x2d0] sm:$0xff] %v2636_v46  ;;  %v2637_v57 = vadd.f32 -1.0, %v1678_v47  ;;  %v1679_v52 = vmul.f32 2.0, %v949_v49 }
 0x247   : > { %v1128_v61 = vpop.f32.mrf.mxu0  ;;  %v951_v62 = vpop.f32.mrf.mxu1 }
 0x248   : > { %2196 = vst [vmem:[%s3596_s4 + $0x400] sm:$0xff] %v2674_v50  ;;  %v2675_v63 = vadd.f32 -1.0, %v1716_v51  ;;  %v1717_v1 = vmul.f32 2.0, %v1128_v61  ;;  %2159 = vst.msk [vmem:[%s3596_s4 + $0x2d8] sm:$0xff] %vm2068_vm1, %v2637_v57  ;;  %v2638_v2 = vadd.f32 -1.0, %v1679_v52  ;;  %v1680_v3 = vmul.f32 2.0, %v951_v62 }
 0x249   : > { %v1130_v4 = vpop.f32.mrf.mxu0  ;;  %v955_v5 = vpop.f32.mrf.mxu1 }
 0x24a   : > { %2197 = vst.msk [vmem:[%s3596_s4 + $0x408] sm:$0xff] %vm2068_vm1, %v2675_v63  ;;  %v2676_v6 = vadd.f32 -1.0, %v1717_v1  ;;  %v1718_v7 = vmul.f32 2.0, %v1130_v4  ;;  %2160 = vst [vmem:[%s3596_s4 + $0x2e0] sm:$0xff] %v2638_v2  ;;  %v2639_v58 = vadd.f32 -1.0, %v1680_v3  ;;  %v1681_v53 = vmul.f32 2.0, %v955_v5 }
 0x24b   : > { %v1134_v8 = vpop.f32.mrf.mxu0  ;;  %v957_v9 = vpop.f32.mrf.mxu1 }
 0x24c   : > { %2198 = vst [vmem:[%s3596_s4 + $0x410] sm:$0xff] %v2676_v6  ;;  %v2677_v10 = vadd.f32 -1.0, %v1718_v7  ;;  %v1719_v11 = vmul.f32 2.0, %v1134_v8  ;;  %2161 = vst.msk [vmem:[%s3596_s4 + $0x2e8] sm:$0xff] %vm2068_vm1, %v2639_v58  ;;  %v2640_v12 = vadd.f32 -1.0, %v1681_v53  ;;  %v1682_v13 = vmul.f32 2.0, %v957_v9 }
 0x24d   : > { %v1136_v14 = vpop.f32.mrf.mxu0  ;;  %v961_v15 = vpop.f32.mrf.mxu1 }
 0x24e   : > { %2199 = vst.msk [vmem:[%s3596_s4 + $0x418] sm:$0xff] %vm2068_vm1, %v2677_v10  ;;  %v2678_v16 = vadd.f32 -1.0, %v1719_v11  ;;  %v1720_v17 = vmul.f32 2.0, %v1136_v14  ;;  %2162 = vst [vmem:[%s3596_s4 + $0x2f0] sm:$0xff] %v2640_v12  ;;  %v2641_v59 = vadd.f32 -1.0, %v1682_v13  ;;  %v1683_v18 = vmul.f32 2.0, %v961_v15 }
 0x24f   : > { %v1140_v54 = vpop.f32.mrf.mxu0  ;;  %v963_v19 = vpop.f32.mrf.mxu1 }
 0x250   : > { %2200 = vst [vmem:[%s3596_s4 + $0x420] sm:$0xff] %v2678_v16  ;;  %v2679_v0 = vadd.f32 -1.0, %v1720_v17  ;;  %v1721_v20 = vmul.f32 2.0, %v1140_v54  ;;  %2163 = vst.msk [vmem:[%s3596_s4 + $0x2f8] sm:$0xff] %vm2068_vm1, %v2641_v59  ;;  %v2642_v21 = vadd.f32 -1.0, %v1683_v18  ;;  %v1684_v22 = vmul.f32 2.0, %v963_v19 }
 0x251   : > { %v1142_v23 = vpop.f32.mrf.mxu0  ;;  %v967_v24 = vpop.f32.mrf.mxu1 }
 0x252   : > { %2201 = vst.msk [vmem:[%s3596_s4 + $0x428] sm:$0xff] %vm2068_vm1, %v2679_v0  ;;  %v2680_v25 = vadd.f32 -1.0, %v1721_v20  ;;  %v1722_v26 = vmul.f32 2.0, %v1142_v23  ;;  %2164 = vst [vmem:[%s3596_s4 + $0x300] sm:$0xff] %v2642_v21  ;;  %v2643_v27 = vadd.f32 -1.0, %v1684_v22  ;;  %v1685_v60 = vmul.f32 2.0, %v967_v24 }
 0x253   : > { %v1146_v28 = vpop.f32.mrf.mxu0  ;;  %v969_v29 = vpop.f32.mrf.mxu1 }
 0x254   : > { %2202 = vst [vmem:[%s3596_s4 + $0x430] sm:$0xff] %v2680_v25  ;;  %v2681_v55 = vadd.f32 -1.0, %v1722_v26  ;;  %v1723_v30 = vmul.f32 2.0, %v1146_v28  ;;  %2165 = vst.msk [vmem:[%s3596_s4 + $0x308] sm:$0xff] %vm2068_vm1, %v2643_v27  ;;  %v2644_v31 = vadd.f32 -1.0, %v1685_v60  ;;  %v1686_v32 = vmul.f32 2.0, %v969_v29 }
 0x255   : > { %v1148_v33 = vpop.f32.mrf.mxu0  ;;  %v973_v34 = vpop.f32.mrf.mxu1 }
 0x256   : > { %2203 = vst.msk [vmem:[%s3596_s4 + $0x438] sm:$0xff] %vm2068_vm1, %v2681_v55  ;;  %v2682_v35 = vadd.f32 -1.0, %v1723_v30  ;;  %v1724_v36 = vmul.f32 2.0, %v1148_v33  ;;  %2166 = vst [vmem:[%s3596_s4 + $0x310] sm:$0xff] %v2644_v31  ;;  %v2645_v37 = vadd.f32 -1.0, %v1686_v32  ;;  %v1687_v38 = vmul.f32 2.0, %v973_v34 }
 0x257   : > { %v1152_v39 = vpop.f32.mrf.mxu0  ;;  %v975_v40 = vpop.f32.mrf.mxu1 }
 0x258   : > { %2204 = vst [vmem:[%s3596_s4 + $0x440] sm:$0xff] %v2682_v35  ;;  %v2683_v56 = vadd.f32 -1.0, %v1724_v36  ;;  %v1725_v41 = vmul.f32 2.0, %v1152_v39  ;;  %2167 = vst.msk [vmem:[%s3596_s4 + $0x318] sm:$0xff] %vm2068_vm1, %v2645_v37  ;;  %v2646_v42 = vadd.f32 -1.0, %v1687_v38  ;;  %v1688_v43 = vmul.f32 2.0, %v975_v40 }
 0x259   : > { %v1154_v44 = vpop.f32.mrf.mxu0  ;;  %v979_v45 = vpop.f32.mrf.mxu1 }
 0x25a   : > { %2205 = vst.msk [vmem:[%s3596_s4 + $0x448] sm:$0xff] %vm2068_vm1, %v2683_v56  ;;  %v2684_v46 = vadd.f32 -1.0, %v1725_v41  ;;  %v1726_v47 = vmul.f32 2.0, %v1154_v44  ;;  %2168 = vst [vmem:[%s3596_s4 + $0x320] sm:$0xff] %v2646_v42  ;;  %v2647_v48 = vadd.f32 -1.0, %v1688_v43  ;;  %v1689_v49 = vmul.f32 2.0, %v979_v45 }
 0x25b   : > { %v1158_v50 = vpop.f32.mrf.mxu0  ;;  %v981_v51 = vpop.f32.mrf.mxu1 }
 0x25c   : > { %2206 = vst [vmem:[%s3596_s4 + $0x450] sm:$0xff] %v2684_v46  ;;  %v2685_v57 = vadd.f32 -1.0, %v1726_v47  ;;  %v1727_v52 = vmul.f32 2.0, %v1158_v50  ;;  %2169 = vst.msk [vmem:[%s3596_s4 + $0x328] sm:$0xff] %vm2068_vm1, %v2647_v48  ;;  %v2648_v61 = vadd.f32 -1.0, %v1689_v49  ;;  %v1690_v62 = vmul.f32 2.0, %v981_v51 }
 0x25d   : > { %v1160_v63 = vpop.f32.mrf.mxu0  ;;  %v985_v1 = vpop.f32.mrf.mxu1 }
 0x25e   : > { %2207 = vst.msk [vmem:[%s3596_s4 + $0x458] sm:$0xff] %vm2068_vm1, %v2685_v57  ;;  %v2686_v2 = vadd.f32 -1.0, %v1727_v52  ;;  %v1728_v3 = vmul.f32 2.0, %v1160_v63  ;;  %2170 = vst [vmem:[%s3596_s4 + $0x330] sm:$0xff] %v2648_v61  ;;  %v2649_v4 = vadd.f32 -1.0, %v1690_v62  ;;  %v1691_v5 = vmul.f32 2.0, %v985_v1 }
 0x25f   : > { %v1164_v6 = vpop.f32.mrf.mxu0  ;;  %v987_v7 = vpop.f32.mrf.mxu1 }
 0x260   : > { %2208 = vst [vmem:[%s3596_s4 + $0x460] sm:$0xff] %v2686_v2  ;;  %v2687_v58 = vadd.f32 -1.0, %v1728_v3  ;;  %v1729_v53 = vmul.f32 2.0, %v1164_v6  ;;  %2171 = vst.msk [vmem:[%s3596_s4 + $0x338] sm:$0xff] %vm2068_vm1, %v2649_v4  ;;  %v2650_v8 = vadd.f32 -1.0, %v1691_v5  ;;  %v1692_v9 = vmul.f32 2.0, %v987_v7 }
 0x261   : > { %v1166_v10 = vpop.f32.mrf.mxu0  ;;  %v991_v11 = vpop.f32.mrf.mxu1 }
 0x262   : > { %2209 = vst.msk [vmem:[%s3596_s4 + $0x468] sm:$0xff] %vm2068_vm1, %v2687_v58  ;;  %v2688_v12 = vadd.f32 -1.0, %v1729_v53  ;;  %v1730_v13 = vmul.f32 2.0, %v1166_v10  ;;  %2172 = vst [vmem:[%s3596_s4 + $0x340] sm:$0xff] %v2650_v8  ;;  %v2651_v14 = vadd.f32 -1.0, %v1692_v9  ;;  %v1693_v15 = vmul.f32 2.0, %v991_v11 }
 0x263   : > { %v1170_v16 = vpop.f32.mrf.mxu0  ;;  %v993_v17 = vpop.f32.mrf.mxu1 }
 0x264   : > { %2210 = vst [vmem:[%s3596_s4 + $0x470] sm:$0xff] %v2688_v12  ;;  %v2689_v59 = vadd.f32 -1.0, %v1730_v13  ;;  %v1731_v18 = vmul.f32 2.0, %v1170_v16  ;;  %2173 = vst.msk [vmem:[%s3596_s4 + $0x348] sm:$0xff] %vm2068_vm1, %v2651_v14  ;;  %v2652_v54 = vadd.f32 -1.0, %v1693_v15  ;;  %v1694_v19 = vmul.f32 2.0, %v993_v17 }
 0x265   : > { %v1172_v0 = vpop.f32.mrf.mxu0  ;;  %v997_v20 = vpop.f32.mrf.mxu1 }
 0x266   : > { %2211 = vst.msk [vmem:[%s3596_s4 + $0x478] sm:$0xff] %vm2068_vm1, %v2689_v59  ;;  %v2690_v21 = vadd.f32 -1.0, %v1731_v18  ;;  %v1732_v22 = vmul.f32 2.0, %v1172_v0  ;;  %2174 = vst [vmem:[%s3596_s4 + $0x350] sm:$0xff] %v2652_v54  ;;  %v2653_v23 = vadd.f32 -1.0, %v1694_v19  ;;  %v1695_v24 = vmul.f32 2.0, %v997_v20 }
 0x267   : > { %v1176_v25 = vpop.f32.mrf.mxu0  ;;  %v999_v26 = vpop.f32.mrf.mxu1 }
 0x268   : > { %2212 = vst [vmem:[%s3596_s4 + $0x480] sm:$0xff] %v2690_v21  ;;  %v2691_v27 = vadd.f32 -1.0, %v1732_v22  ;;  %v1733_v60 = vmul.f32 2.0, %v1176_v25  ;;  %2175 = vst.msk [vmem:[%s3596_s4 + $0x358] sm:$0xff] %vm2068_vm1, %v2653_v23  ;;  %v2654_v28 = vadd.f32 -1.0, %v1695_v24  ;;  %v1696_v29 = vmul.f32 2.0, %v999_v26 }
 0x269   : > { %v1178_v55 = vpop.f32.mrf.mxu0  ;;  %v1003_v30 = vpop.f32.mrf.mxu1 }
 0x26a   : > { %2213 = vst.msk [vmem:[%s3596_s4 + $0x488] sm:$0xff] %vm2068_vm1, %v2691_v27  ;;  %v2692_v31 = vadd.f32 -1.0, %v1733_v60  ;;  %v1734_v32 = vmul.f32 2.0, %v1178_v55  ;;  %2176 = vst [vmem:[%s3596_s4 + $0x360] sm:$0xff] %v2654_v28  ;;  %v2655_v33 = vadd.f32 -1.0, %v1696_v29  ;;  %v1697_v34 = vmul.f32 2.0, %v1003_v30 }
 0x26b   : > { %v1182_v35 = vpop.f32.mrf.mxu0  ;;  %v1005_v36 = vpop.f32.mrf.mxu1 }
 0x26c   : > { %2214 = vst [vmem:[%s3596_s4 + $0x490] sm:$0xff] %v2692_v31  ;;  %v2693_v37 = vadd.f32 -1.0, %v1734_v32  ;;  %v1735_v38 = vmul.f32 2.0, %v1182_v35  ;;  %2177 = vst.msk [vmem:[%s3596_s4 + $0x368] sm:$0xff] %vm2068_vm1, %v2655_v33  ;;  %v2656_v39 = vadd.f32 -1.0, %v1697_v34  ;;  %v1698_v40 = vmul.f32 2.0, %v1005_v36 }
 0x26d   : > { %v1184_v56 = vpop.f32.mrf.mxu0  ;;  %v1009_v41 = vpop.f32.mrf.mxu1 }
 0x26e   : > { %2215 = vst.msk [vmem:[%s3596_s4 + $0x498] sm:$0xff] %vm2068_vm1, %v2693_v37  ;;  %v2694_v42 = vadd.f32 -1.0, %v1735_v38  ;;  %v1736_v43 = vmul.f32 2.0, %v1184_v56  ;;  %2178 = vst [vmem:[%s3596_s4 + $0x370] sm:$0xff] %v2656_v39  ;;  %v2657_v44 = vadd.f32 -1.0, %v1698_v40  ;;  %v1699_v45 = vmul.f32 2.0, %v1009_v41 }
 0x26f   : > { %v1188_v46 = vpop.f32.mrf.mxu0  ;;  %v1011_v47 = vpop.f32.mrf.mxu1 }
 0x270   : > { %2216 = vst [vmem:[%s3596_s4 + $0x4a0] sm:$0xff] %v2694_v42  ;;  %v2695_v48 = vadd.f32 -1.0, %v1736_v43  ;;  %v1737_v49 = vmul.f32 2.0, %v1188_v46  ;;  %2179 = vst.msk [vmem:[%s3596_s4 + $0x378] sm:$0xff] %vm2068_vm1, %v2657_v44  ;;  %v2658_v50 = vadd.f32 -1.0, %v1699_v45  ;;  %v1700_v51 = vmul.f32 2.0, %v1011_v47 }
 0x271   : > { %v1190_v57 = vpop.f32.mrf.mxu0  ;;  %v1015_v52 = vpop.f32.mrf.mxu1 }
 0x272   : > { %2217 = vst.msk [vmem:[%s3596_s4 + $0x4a8] sm:$0xff] %vm2068_vm1, %v2695_v48  ;;  %v2696_v61 = vadd.f32 -1.0, %v1737_v49  ;;  %v1738_v62 = vmul.f32 2.0, %v1190_v57  ;;  %2180 = vst [vmem:[%s3596_s4 + $0x380] sm:$0xff] %v2658_v50  ;;  %v2659_v63 = vadd.f32 -1.0, %v1700_v51  ;;  %v1701_v1 = vmul.f32 2.0, %v1015_v52 }
 0x273   : > { %v1194_v2 = vpop.f32.mrf.mxu0  ;;  %v1017_v3 = vpop.f32.mrf.mxu1 }
 0x274   : > { %2218 = vst [vmem:[%s3596_s4 + $0x4b0] sm:$0xff] %v2696_v61  ;;  %v2697_v4 = vadd.f32 -1.0, %v1738_v62  ;;  %v1739_v5 = vmul.f32 2.0, %v1194_v2  ;;  %2181 = vst.msk [vmem:[%s3596_s4 + $0x388] sm:$0xff] %vm2068_vm1, %v2659_v63  ;;  %v2660_v6 = vadd.f32 -1.0, %v1701_v1  ;;  %v1702_v7 = vmul.f32 2.0, %v1017_v3 }
 0x275   : > { %v1196_v58 = vpop.f32.mrf.mxu0  ;;  %v1021_v53 = vpop.f32.mrf.mxu1 }
 0x276   : > { %2219 = vst.msk [vmem:[%s3596_s4 + $0x4b8] sm:$0xff] %vm2068_vm1, %v2697_v4  ;;  %v2698_v8 = vadd.f32 -1.0, %v1739_v5  ;;  %v1740_v9 = vmul.f32 2.0, %v1196_v58  ;;  %2182 = vst [vmem:[%s3596_s4 + $0x390] sm:$0xff] %v2660_v6  ;;  %v2661_v10 = vadd.f32 -1.0, %v1702_v7  ;;  %v1703_v11 = vmul.f32 2.0, %v1021_v53 }
 0x277   : > { %v1200_v12 = vpop.f32.mrf.mxu0  ;;  %v1023_v13 = vpop.f32.mrf.mxu1 }
 0x278   : > { %2220 = vst [vmem:[%s3596_s4 + $0x4c0] sm:$0xff] %v2698_v8  ;;  %v2699_v14 = vadd.f32 -1.0, %v1740_v9  ;;  %v1741_v15 = vmul.f32 2.0, %v1200_v12  ;;  %2183 = vst.msk [vmem:[%s3596_s4 + $0x398] sm:$0xff] %vm2068_vm1, %v2661_v10  ;;  %v2662_v16 = vadd.f32 -1.0, %v1703_v11  ;;  %v1704_v17 = vmul.f32 2.0, %v1023_v13 }
 0x279   : > { %v1202_v59 = vpop.f32.mrf.mxu0  ;;  %v1027_v18 = vpop.f32.mrf.mxu1 }
 0x27a   : > { %2221 = vst.msk [vmem:[%s3596_s4 + $0x4c8] sm:$0xff] %vm2068_vm1, %v2699_v14  ;;  %v2700_v54 = vadd.f32 -1.0, %v1741_v15  ;;  %v1742_v19 = vmul.f32 2.0, %v1202_v59  ;;  %2184 = vst [vmem:[%s3596_s4 + $0x3a0] sm:$0xff] %v2662_v16  ;;  %v2663_v0 = vadd.f32 -1.0, %v1704_v17  ;;  %v1705_v20 = vmul.f32 2.0, %v1027_v18 }
 0x27b   : > { %v1206_v21 = vpop.f32.mrf.mxu0  ;;  %v1029_v22 = vpop.f32.mrf.mxu1 }
 0x27c   : > { %2222 = vst [vmem:[%s3596_s4 + $0x4d0] sm:$0xff] %v2700_v54  ;;  %v2701_v23 = vadd.f32 -1.0, %v1742_v19  ;;  %v1743_v24 = vmul.f32 2.0, %v1206_v21  ;;  %2185 = vst.msk [vmem:[%s3596_s4 + $0x3a8] sm:$0xff] %vm2068_vm1, %v2663_v0  ;;  %v2664_v25 = vadd.f32 -1.0, %v1705_v20  ;;  %v1706_v26 = vmul.f32 2.0, %v1029_v22 }
 0x27d   : > { %v1208_v27 = vpop.f32.mrf.mxu0  ;;  %v1283_v60 = vpop.f32.mrf.mxu1 }
 0x27e   : > { %2223 = vst.msk [vmem:[%s3596_s4 + $0x4d8] sm:$0xff] %vm2068_vm1, %v2701_v23  ;;  %v2702_v28 = vadd.f32 -1.0, %v1743_v24  ;;  %v1744_v29 = vmul.f32 2.0, %v1208_v27  ;;  %2186 = vst [vmem:[%s3596_s4 + $0x3b0] sm:$0xff] %v2664_v25  ;;  %v2665_v55 = vadd.f32 -1.0, %v1706_v26  ;;  %v1747_v30 = vmul.f32 2.0, %v1283_v60 }
 0x27f   : > { %v1212_v31 = vpop.f32.mrf.mxu0  ;;  %v1285_v32 = vpop.f32.mrf.mxu1 }
 0x280   : > { %2224 = vst [vmem:[%s3596_s4 + $0x4e0] sm:$0xff] %v2702_v28  ;;  %v2703_v33 = vadd.f32 -1.0, %v1744_v29  ;;  %v1745_v34 = vmul.f32 2.0, %v1212_v31  ;;  %2187 = vst.msk [vmem:[%s3596_s4 + $0x3b8] sm:$0xff] %vm2068_vm1, %v2665_v55  ;;  %v2706_v35 = vadd.f32 -1.0, %v1747_v30  ;;  %v1748_v36 = vmul.f32 2.0, %v1285_v32 }
 0x281   : > { %v1214_v37 = vpop.f32.mrf.mxu0  ;;  %v1289_v38 = vpop.f32.mrf.mxu1 }
 0x282   : > { %2225 = vst.msk [vmem:[%s3596_s4 + $0x4e8] sm:$0xff] %vm2068_vm1, %v2703_v33  ;;  %v2704_v39 = vadd.f32 -1.0, %v1745_v34  ;;  %v1746_v40 = vmul.f32 2.0, %v1214_v37  ;;  %2228 = vst [vmem:[%s3596_s4 + $0x500] sm:$0xff] %v2706_v35  ;;  %v2707_v56 = vadd.f32 -1.0, %v1748_v36  ;;  %v1749_v41 = vmul.f32 2.0, %v1289_v38 }
 0x283   : > { %v1468_v42 = vpop.f32.mrf.mxu0  ;;  %v1291_v43 = vpop.f32.mrf.mxu1 }
 0x284   : > { %2226 = vst [vmem:[%s3596_s4 + $0x4f0] sm:$0xff] %v2704_v39  ;;  %v2705_v44 = vadd.f32 -1.0, %v1746_v40  ;;  %v1787_v45 = vmul.f32 2.0, %v1468_v42  ;;  %2229 = vst.msk [vmem:[%s3596_s4 + $0x508] sm:$0xff] %vm2068_vm1, %v2707_v56  ;;  %v2708_v46 = vadd.f32 -1.0, %v1749_v41  ;;  %v1750_v47 = vmul.f32 2.0, %v1291_v43 }
 0x285   : > { %v1470_v48 = vpop.f32.mrf.mxu0  ;;  %v1295_v49 = vpop.f32.mrf.mxu1 }
 0x286   : > { %2227 = vst.msk [vmem:[%s3596_s4 + $0x4f8] sm:$0xff] %vm2068_vm1, %v2705_v44  ;;  %v2746_v50 = vadd.f32 -1.0, %v1787_v45  ;;  %v1788_v51 = vmul.f32 2.0, %v1470_v48  ;;  %2230 = vst [vmem:[%s3596_s4 + $0x510] sm:$0xff] %v2708_v46  ;;  %v2709_v57 = vadd.f32 -1.0, %v1750_v47  ;;  %v1751_v52 = vmul.f32 2.0, %v1295_v49 }
 0x287   : > { %v1474_v61 = vpop.f32.mrf.mxu0  ;;  %v1297_v62 = vpop.f32.mrf.mxu1 }
 0x288   : > { %2268 = vst [vmem:[%s3596_s4 + $0x640] sm:$0xff] %v2746_v50  ;;  %v2747_v63 = vadd.f32 -1.0, %v1788_v51  ;;  %v1789_v1 = vmul.f32 2.0, %v1474_v61  ;;  %2231 = vst.msk [vmem:[%s3596_s4 + $0x518] sm:$0xff] %vm2068_vm1, %v2709_v57  ;;  %v2710_v2 = vadd.f32 -1.0, %v1751_v52  ;;  %v1752_v3 = vmul.f32 2.0, %v1297_v62 }
 0x289   : > { %v1476_v4 = vpop.f32.mrf.mxu0  ;;  %v1301_v5 = vpop.f32.mrf.mxu1 }
 0x28a   : > { %2269 = vst.msk [vmem:[%s3596_s4 + $0x648] sm:$0xff] %vm2068_vm1, %v2747_v63  ;;  %v2748_v6 = vadd.f32 -1.0, %v1789_v1  ;;  %v1790_v7 = vmul.f32 2.0, %v1476_v4  ;;  %2232 = vst [vmem:[%s3596_s4 + $0x520] sm:$0xff] %v2710_v2  ;;  %v2711_v58 = vadd.f32 -1.0, %v1752_v3  ;;  %v1753_v53 = vmul.f32 2.0, %v1301_v5 }
 0x28b   : > { %v1480_v8 = vpop.f32.mrf.mxu0  ;;  %v1303_v9 = vpop.f32.mrf.mxu1 }
 0x28c   : > { %2270 = vst [vmem:[%s3596_s4 + $0x650] sm:$0xff] %v2748_v6  ;;  %v2749_v10 = vadd.f32 -1.0, %v1790_v7  ;;  %v1791_v11 = vmul.f32 2.0, %v1480_v8  ;;  %2233 = vst.msk [vmem:[%s3596_s4 + $0x528] sm:$0xff] %vm2068_vm1, %v2711_v58  ;;  %v2712_v12 = vadd.f32 -1.0, %v1753_v53  ;;  %v1754_v13 = vmul.f32 2.0, %v1303_v9 }
 0x28d   : > { %v1482_v14 = vpop.f32.mrf.mxu0  ;;  %v1307_v15 = vpop.f32.mrf.mxu1 }
 0x28e   : > { %2271 = vst.msk [vmem:[%s3596_s4 + $0x658] sm:$0xff] %vm2068_vm1, %v2749_v10  ;;  %v2750_v16 = vadd.f32 -1.0, %v1791_v11  ;;  %v1792_v17 = vmul.f32 2.0, %v1482_v14  ;;  %2234 = vst [vmem:[%s3596_s4 + $0x530] sm:$0xff] %v2712_v12  ;;  %v2713_v59 = vadd.f32 -1.0, %v1754_v13  ;;  %v1755_v18 = vmul.f32 2.0, %v1307_v15 }
 0x28f   : > { %v1486_v54 = vpop.f32.mrf.mxu0  ;;  %v1309_v19 = vpop.f32.mrf.mxu1 }
 0x290   : > { %2272 = vst [vmem:[%s3596_s4 + $0x660] sm:$0xff] %v2750_v16  ;;  %v2751_v0 = vadd.f32 -1.0, %v1792_v17  ;;  %v1793_v20 = vmul.f32 2.0, %v1486_v54  ;;  %2235 = vst.msk [vmem:[%s3596_s4 + $0x538] sm:$0xff] %vm2068_vm1, %v2713_v59  ;;  %v2714_v21 = vadd.f32 -1.0, %v1755_v18  ;;  %v1756_v22 = vmul.f32 2.0, %v1309_v19 }
 0x291   : > { %v1488_v23 = vpop.f32.mrf.mxu0  ;;  %v1313_v24 = vpop.f32.mrf.mxu1 }
 0x292   : > { %2273 = vst.msk [vmem:[%s3596_s4 + $0x668] sm:$0xff] %vm2068_vm1, %v2751_v0  ;;  %v2752_v25 = vadd.f32 -1.0, %v1793_v20  ;;  %v1794_v26 = vmul.f32 2.0, %v1488_v23  ;;  %2236 = vst [vmem:[%s3596_s4 + $0x540] sm:$0xff] %v2714_v21  ;;  %v2715_v27 = vadd.f32 -1.0, %v1756_v22  ;;  %v1757_v60 = vmul.f32 2.0, %v1313_v24 }
 0x293   : > { %v1492_v28 = vpop.f32.mrf.mxu0  ;;  %v1315_v29 = vpop.f32.mrf.mxu1 }
 0x294   : > { %2274 = vst [vmem:[%s3596_s4 + $0x670] sm:$0xff] %v2752_v25  ;;  %v2753_v55 = vadd.f32 -1.0, %v1794_v26  ;;  %v1795_v30 = vmul.f32 2.0, %v1492_v28  ;;  %2237 = vst.msk [vmem:[%s3596_s4 + $0x548] sm:$0xff] %vm2068_vm1, %v2715_v27  ;;  %v2716_v31 = vadd.f32 -1.0, %v1757_v60  ;;  %v1758_v32 = vmul.f32 2.0, %v1315_v29 }
 0x295   : > { %v1494_v33 = vpop.f32.mrf.mxu0  ;;  %v1319_v34 = vpop.f32.mrf.mxu1 }
 0x296   : > { %2275 = vst.msk [vmem:[%s3596_s4 + $0x678] sm:$0xff] %vm2068_vm1, %v2753_v55  ;;  %v2754_v35 = vadd.f32 -1.0, %v1795_v30  ;;  %v1796_v36 = vmul.f32 2.0, %v1494_v33  ;;  %2238 = vst [vmem:[%s3596_s4 + $0x550] sm:$0xff] %v2716_v31  ;;  %v2717_v37 = vadd.f32 -1.0, %v1758_v32  ;;  %v1759_v38 = vmul.f32 2.0, %v1319_v34 }
 0x297   : > { %v1498_v39 = vpop.f32.mrf.mxu0  ;;  %v1321_v40 = vpop.f32.mrf.mxu1 }
 0x298   : > { %2276 = vst [vmem:[%s3596_s4 + $0x680] sm:$0xff] %v2754_v35  ;;  %v2755_v56 = vadd.f32 -1.0, %v1796_v36  ;;  %v1797_v41 = vmul.f32 2.0, %v1498_v39  ;;  %2239 = vst.msk [vmem:[%s3596_s4 + $0x558] sm:$0xff] %vm2068_vm1, %v2717_v37  ;;  %v2718_v42 = vadd.f32 -1.0, %v1759_v38  ;;  %v1760_v43 = vmul.f32 2.0, %v1321_v40 }
 0x299   : > { %v1500_v44 = vpop.f32.mrf.mxu0  ;;  %v1325_v45 = vpop.f32.mrf.mxu1 }
 0x29a   : > { %2277 = vst.msk [vmem:[%s3596_s4 + $0x688] sm:$0xff] %vm2068_vm1, %v2755_v56  ;;  %v2756_v46 = vadd.f32 -1.0, %v1797_v41  ;;  %v1798_v47 = vmul.f32 2.0, %v1500_v44  ;;  %2240 = vst [vmem:[%s3596_s4 + $0x560] sm:$0xff] %v2718_v42  ;;  %v2719_v48 = vadd.f32 -1.0, %v1760_v43  ;;  %v1761_v49 = vmul.f32 2.0, %v1325_v45 }
 0x29b   : > { %v1504_v50 = vpop.f32.mrf.mxu0  ;;  %v1327_v51 = vpop.f32.mrf.mxu1 }
 0x29c   : > { %2278 = vst [vmem:[%s3596_s4 + $0x690] sm:$0xff] %v2756_v46  ;;  %v2757_v57 = vadd.f32 -1.0, %v1798_v47  ;;  %v1799_v52 = vmul.f32 2.0, %v1504_v50  ;;  %2241 = vst.msk [vmem:[%s3596_s4 + $0x568] sm:$0xff] %vm2068_vm1, %v2719_v48  ;;  %v2720_v61 = vadd.f32 -1.0, %v1761_v49  ;;  %v1762_v62 = vmul.f32 2.0, %v1327_v51 }
 0x29d   : > { %v1506_v63 = vpop.f32.mrf.mxu0  ;;  %v1331_v1 = vpop.f32.mrf.mxu1 }
 0x29e   : > { %2279 = vst.msk [vmem:[%s3596_s4 + $0x698] sm:$0xff] %vm2068_vm1, %v2757_v57  ;;  %v2758_v2 = vadd.f32 -1.0, %v1799_v52  ;;  %v1800_v3 = vmul.f32 2.0, %v1506_v63  ;;  %2242 = vst [vmem:[%s3596_s4 + $0x570] sm:$0xff] %v2720_v61  ;;  %v2721_v4 = vadd.f32 -1.0, %v1762_v62  ;;  %v1763_v5 = vmul.f32 2.0, %v1331_v1 }
 0x29f   : > { %v1510_v6 = vpop.f32.mrf.mxu0  ;;  %v1333_v7 = vpop.f32.mrf.mxu1 }
 0x2a0   : > { %2280 = vst [vmem:[%s3596_s4 + $0x6a0] sm:$0xff] %v2758_v2  ;;  %v2759_v58 = vadd.f32 -1.0, %v1800_v3  ;;  %v1801_v53 = vmul.f32 2.0, %v1510_v6  ;;  %2243 = vst.msk [vmem:[%s3596_s4 + $0x578] sm:$0xff] %vm2068_vm1, %v2721_v4  ;;  %v2722_v8 = vadd.f32 -1.0, %v1763_v5  ;;  %v1764_v9 = vmul.f32 2.0, %v1333_v7 }
 0x2a1   : > { %v1512_v10 = vpop.f32.mrf.mxu0  ;;  %v1337_v11 = vpop.f32.mrf.mxu1 }
 0x2a2   : > { %2281 = vst.msk [vmem:[%s3596_s4 + $0x6a8] sm:$0xff] %vm2068_vm1, %v2759_v58  ;;  %v2760_v12 = vadd.f32 -1.0, %v1801_v53  ;;  %v1802_v13 = vmul.f32 2.0, %v1512_v10  ;;  %2244 = vst [vmem:[%s3596_s4 + $0x580] sm:$0xff] %v2722_v8  ;;  %v2723_v14 = vadd.f32 -1.0, %v1764_v9  ;;  %v1765_v15 = vmul.f32 2.0, %v1337_v11 }
 0x2a3   : > { %v1516_v16 = vpop.f32.mrf.mxu0  ;;  %v1339_v17 = vpop.f32.mrf.mxu1 }
 0x2a4   : > { %2282 = vst [vmem:[%s3596_s4 + $0x6b0] sm:$0xff] %v2760_v12  ;;  %v2761_v59 = vadd.f32 -1.0, %v1802_v13  ;;  %v1803_v18 = vmul.f32 2.0, %v1516_v16  ;;  %2245 = vst.msk [vmem:[%s3596_s4 + $0x588] sm:$0xff] %vm2068_vm1, %v2723_v14  ;;  %v2724_v54 = vadd.f32 -1.0, %v1765_v15  ;;  %v1766_v19 = vmul.f32 2.0, %v1339_v17 }
 0x2a5   : > { %v1518_v0 = vpop.f32.mrf.mxu0  ;;  %v1343_v20 = vpop.f32.mrf.mxu1 }
 0x2a6   : > { %2283 = vst.msk [vmem:[%s3596_s4 + $0x6b8] sm:$0xff] %vm2068_vm1, %v2761_v59  ;;  %v2762_v21 = vadd.f32 -1.0, %v1803_v18  ;;  %v1804_v22 = vmul.f32 2.0, %v1518_v0  ;;  %2246 = vst [vmem:[%s3596_s4 + $0x590] sm:$0xff] %v2724_v54  ;;  %v2725_v23 = vadd.f32 -1.0, %v1766_v19  ;;  %v1767_v24 = vmul.f32 2.0, %v1343_v20 }
 0x2a7   : > { %v1522_v25 = vpop.f32.mrf.mxu0  ;;  %v1345_v26 = vpop.f32.mrf.mxu1 }
 0x2a8   : > { %2284 = vst [vmem:[%s3596_s4 + $0x6c0] sm:$0xff] %v2762_v21  ;;  %v2763_v27 = vadd.f32 -1.0, %v1804_v22  ;;  %v1805_v60 = vmul.f32 2.0, %v1522_v25  ;;  %2247 = vst.msk [vmem:[%s3596_s4 + $0x598] sm:$0xff] %vm2068_vm1, %v2725_v23  ;;  %v2726_v28 = vadd.f32 -1.0, %v1767_v24  ;;  %v1768_v29 = vmul.f32 2.0, %v1345_v26 }
 0x2a9   : > { %v1524_v55 = vpop.f32.mrf.mxu0  ;;  %v1349_v30 = vpop.f32.mrf.mxu1 }
 0x2aa   : > { %2285 = vst.msk [vmem:[%s3596_s4 + $0x6c8] sm:$0xff] %vm2068_vm1, %v2763_v27  ;;  %v2764_v31 = vadd.f32 -1.0, %v1805_v60  ;;  %v1806_v32 = vmul.f32 2.0, %v1524_v55  ;;  %2248 = vst [vmem:[%s3596_s4 + $0x5a0] sm:$0xff] %v2726_v28  ;;  %v2727_v33 = vadd.f32 -1.0, %v1768_v29  ;;  %v1769_v34 = vmul.f32 2.0, %v1349_v30 }
 0x2ab   : > { %v1528_v35 = vpop.f32.mrf.mxu0  ;;  %v1351_v36 = vpop.f32.mrf.mxu1 }
 0x2ac   : > { %2286 = vst [vmem:[%s3596_s4 + $0x6d0] sm:$0xff] %v2764_v31  ;;  %v2765_v37 = vadd.f32 -1.0, %v1806_v32  ;;  %v1807_v38 = vmul.f32 2.0, %v1528_v35  ;;  %2249 = vst.msk [vmem:[%s3596_s4 + $0x5a8] sm:$0xff] %vm2068_vm1, %v2727_v33  ;;  %v2728_v39 = vadd.f32 -1.0, %v1769_v34  ;;  %v1770_v40 = vmul.f32 2.0, %v1351_v36 }
 0x2ad   : > { %v1530_v56 = vpop.f32.mrf.mxu0  ;;  %v1355_v41 = vpop.f32.mrf.mxu1 }
 0x2ae   : > { %2287 = vst.msk [vmem:[%s3596_s4 + $0x6d8] sm:$0xff] %vm2068_vm1, %v2765_v37  ;;  %v2766_v42 = vadd.f32 -1.0, %v1807_v38  ;;  %v1808_v43 = vmul.f32 2.0, %v1530_v56  ;;  %2250 = vst [vmem:[%s3596_s4 + $0x5b0] sm:$0xff] %v2728_v39  ;;  %v2729_v44 = vadd.f32 -1.0, %v1770_v40  ;;  %v1771_v45 = vmul.f32 2.0, %v1355_v41 }
 0x2af   : > { %v1534_v46 = vpop.f32.mrf.mxu0  ;;  %v1357_v47 = vpop.f32.mrf.mxu1 }
 0x2b0   : > { %2288 = vst [vmem:[%s3596_s4 + $0x6e0] sm:$0xff] %v2766_v42  ;;  %v2767_v48 = vadd.f32 -1.0, %v1808_v43  ;;  %v1809_v49 = vmul.f32 2.0, %v1534_v46  ;;  %2251 = vst.msk [vmem:[%s3596_s4 + $0x5b8] sm:$0xff] %vm2068_vm1, %v2729_v44  ;;  %v2730_v50 = vadd.f32 -1.0, %v1771_v45  ;;  %v1772_v51 = vmul.f32 2.0, %v1357_v47 }
 0x2b1   : > { %v1536_v57 = vpop.f32.mrf.mxu0  ;;  %v1361_v52 = vpop.f32.mrf.mxu1 }
 0x2b2   : > { %2289 = vst.msk [vmem:[%s3596_s4 + $0x6e8] sm:$0xff] %vm2068_vm1, %v2767_v48  ;;  %v2768_v61 = vadd.f32 -1.0, %v1809_v49  ;;  %v1810_v62 = vmul.f32 2.0, %v1536_v57  ;;  %2252 = vst [vmem:[%s3596_s4 + $0x5c0] sm:$0xff] %v2730_v50  ;;  %v2731_v63 = vadd.f32 -1.0, %v1772_v51  ;;  %v1773_v1 = vmul.f32 2.0, %v1361_v52 }
 0x2b3   : > { %v1540_v2 = vpop.f32.mrf.mxu0  ;;  %v1363_v3 = vpop.f32.mrf.mxu1 }
 0x2b4   : > { %2290 = vst [vmem:[%s3596_s4 + $0x6f0] sm:$0xff] %v2768_v61  ;;  %v2769_v4 = vadd.f32 -1.0, %v1810_v62  ;;  %v1811_v5 = vmul.f32 2.0, %v1540_v2  ;;  %2253 = vst.msk [vmem:[%s3596_s4 + $0x5c8] sm:$0xff] %vm2068_vm1, %v2731_v63  ;;  %v2732_v6 = vadd.f32 -1.0, %v1773_v1  ;;  %v1774_v7 = vmul.f32 2.0, %v1363_v3 }
 0x2b5   : > { %v1542_v58 = vpop.f32.mrf.mxu0  ;;  %v1367_v53 = vpop.f32.mrf.mxu1 }
 0x2b6   : > { %2291 = vst.msk [vmem:[%s3596_s4 + $0x6f8] sm:$0xff] %vm2068_vm1, %v2769_v4  ;;  %v2770_v8 = vadd.f32 -1.0, %v1811_v5  ;;  %v1812_v9 = vmul.f32 2.0, %v1542_v58  ;;  %2254 = vst [vmem:[%s3596_s4 + $0x5d0] sm:$0xff] %v2732_v6  ;;  %v2733_v10 = vadd.f32 -1.0, %v1774_v7  ;;  %v1775_v11 = vmul.f32 2.0, %v1367_v53 }
 0x2b7   : > { %v1546_v12 = vpop.f32.mrf.mxu0  ;;  %v1369_v13 = vpop.f32.mrf.mxu1 }
 0x2b8   : > { %2292 = vst [vmem:[%s3596_s4 + $0x700] sm:$0xff] %v2770_v8  ;;  %v2771_v14 = vadd.f32 -1.0, %v1812_v9  ;;  %v1813_v15 = vmul.f32 2.0, %v1546_v12  ;;  %2255 = vst.msk [vmem:[%s3596_s4 + $0x5d8] sm:$0xff] %vm2068_vm1, %v2733_v10  ;;  %v2734_v16 = vadd.f32 -1.0, %v1775_v11  ;;  %v1776_v17 = vmul.f32 2.0, %v1369_v13 }
 0x2b9   : > { %v1548_v59 = vpop.f32.mrf.mxu0  ;;  %v1373_v18 = vpop.f32.mrf.mxu1 }
 0x2ba   : > { %2293 = vst.msk [vmem:[%s3596_s4 + $0x708] sm:$0xff] %vm2068_vm1, %v2771_v14  ;;  %v2772_v54 = vadd.f32 -1.0, %v1813_v15  ;;  %v1814_v19 = vmul.f32 2.0, %v1548_v59  ;;  %2256 = vst [vmem:[%s3596_s4 + $0x5e0] sm:$0xff] %v2734_v16  ;;  %v2735_v0 = vadd.f32 -1.0, %v1776_v17  ;;  %v1777_v20 = vmul.f32 2.0, %v1373_v18 }
 0x2bb   : > { %v1552_v21 = vpop.f32.mrf.mxu0  ;;  %v1375_v22 = vpop.f32.mrf.mxu1 }
 0x2bc   : > { %2294 = vst [vmem:[%s3596_s4 + $0x710] sm:$0xff] %v2772_v54  ;;  %v2773_v23 = vadd.f32 -1.0, %v1814_v19  ;;  %v1815_v24 = vmul.f32 2.0, %v1552_v21  ;;  %2257 = vst.msk [vmem:[%s3596_s4 + $0x5e8] sm:$0xff] %vm2068_vm1, %v2735_v0  ;;  %v2736_v25 = vadd.f32 -1.0, %v1777_v20  ;;  %v1778_v26 = vmul.f32 2.0, %v1375_v22 }
 0x2bd   : > { %v1554_v27 = vpop.f32.mrf.mxu0  ;;  %v1379_v60 = vpop.f32.mrf.mxu1 }
 0x2be   : > { %2295 = vst.msk [vmem:[%s3596_s4 + $0x718] sm:$0xff] %vm2068_vm1, %v2773_v23  ;;  %v2774_v28 = vadd.f32 -1.0, %v1815_v24  ;;  %v1816_v29 = vmul.f32 2.0, %v1554_v27  ;;  %2258 = vst [vmem:[%s3596_s4 + $0x5f0] sm:$0xff] %v2736_v25  ;;  %v2737_v55 = vadd.f32 -1.0, %v1778_v26  ;;  %v1779_v30 = vmul.f32 2.0, %v1379_v60 }
 0x2bf   : > { %v1558_v31 = vpop.f32.mrf.mxu0  ;;  %v1381_v32 = vpop.f32.mrf.mxu1 }
 0x2c0   : > { %2296 = vst [vmem:[%s3596_s4 + $0x720] sm:$0xff] %v2774_v28  ;;  %v2775_v33 = vadd.f32 -1.0, %v1816_v29  ;;  %v1817_v34 = vmul.f32 2.0, %v1558_v31  ;;  %2259 = vst.msk [vmem:[%s3596_s4 + $0x5f8] sm:$0xff] %vm2068_vm1, %v2737_v55  ;;  %v2738_v35 = vadd.f32 -1.0, %v1779_v30  ;;  %v1780_v36 = vmul.f32 2.0, %v1381_v32 }
 0x2c1   : > { %v1560_v37 = vpop.f32.mrf.mxu0  ;;  %v1385_v38 = vpop.f32.mrf.mxu1 }
 0x2c2   : > { %2297 = vst.msk [vmem:[%s3596_s4 + $0x728] sm:$0xff] %vm2068_vm1, %v2775_v33  ;;  %v2776_v39 = vadd.f32 -1.0, %v1817_v34  ;;  %v1818_v40 = vmul.f32 2.0, %v1560_v37  ;;  %2260 = vst [vmem:[%s3596_s4 + $0x600] sm:$0xff] %v2738_v35  ;;  %v2739_v56 = vadd.f32 -1.0, %v1780_v36  ;;  %v1781_v41 = vmul.f32 2.0, %v1385_v38 }
 0x2c3   : > { %v1564_v42 = vpop.f32.mrf.mxu0  ;;  %v1387_v43 = vpop.f32.mrf.mxu1 }
 0x2c4   : > { %2298 = vst [vmem:[%s3596_s4 + $0x730] sm:$0xff] %v2776_v39  ;;  %v2777_v44 = vadd.f32 -1.0, %v1818_v40  ;;  %v1819_v45 = vmul.f32 2.0, %v1564_v42  ;;  %2261 = vst.msk [vmem:[%s3596_s4 + $0x608] sm:$0xff] %vm2068_vm1, %v2739_v56  ;;  %v2740_v46 = vadd.f32 -1.0, %v1781_v41  ;;  %v1782_v47 = vmul.f32 2.0, %v1387_v43 }
 0x2c5   : > { %v1566_v48 = vpop.f32.mrf.mxu0  ;;  %v1391_v49 = vpop.f32.mrf.mxu1 }
 0x2c6   : > { %2299 = vst.msk [vmem:[%s3596_s4 + $0x738] sm:$0xff] %vm2068_vm1, %v2777_v44  ;;  %v2778_v50 = vadd.f32 -1.0, %v1819_v45  ;;  %v1820_v51 = vmul.f32 2.0, %v1566_v48  ;;  %2262 = vst [vmem:[%s3596_s4 + $0x610] sm:$0xff] %v2740_v46  ;;  %v2741_v57 = vadd.f32 -1.0, %v1782_v47  ;;  %v1783_v52 = vmul.f32 2.0, %v1391_v49 }
 0x2c7   : > { %v1570_v61 = vpop.f32.mrf.mxu0  ;;  %v1393_v62 = vpop.f32.mrf.mxu1 }
 0x2c8   : > { %2300 = vst [vmem:[%s3596_s4 + $0x740] sm:$0xff] %v2778_v50  ;;  %v2779_v63 = vadd.f32 -1.0, %v1820_v51  ;;  %v1821_v1 = vmul.f32 2.0, %v1570_v61  ;;  %2263 = vst.msk [vmem:[%s3596_s4 + $0x618] sm:$0xff] %vm2068_vm1, %v2741_v57  ;;  %v2742_v2 = vadd.f32 -1.0, %v1783_v52  ;;  %v1784_v3 = vmul.f32 2.0, %v1393_v62 }
 0x2c9   : > { %v1572_v4 = vpop.f32.mrf.mxu0  ;;  %v1397_v5 = vpop.f32.mrf.mxu1 }
 0x2ca   : > { %2301 = vst.msk [vmem:[%s3596_s4 + $0x748] sm:$0xff] %vm2068_vm1, %v2779_v63  ;;  %v2780_v6 = vadd.f32 -1.0, %v1821_v1  ;;  %v1822_v7 = vmul.f32 2.0, %v1572_v4  ;;  %2264 = vst [vmem:[%s3596_s4 + $0x620] sm:$0xff] %v2742_v2  ;;  %v2743_v58 = vadd.f32 -1.0, %v1784_v3  ;;  %v1785_v53 = vmul.f32 2.0, %v1397_v5 }
 0x2cb   : > { %v1576_v8 = vpop.f32.mrf.mxu0  ;;  %v1399_v9 = vpop.f32.mrf.mxu1 }
 0x2cc   : > { %2302 = vst [vmem:[%s3596_s4 + $0x750] sm:$0xff] %v2780_v6  ;;  %v2781_v10 = vadd.f32 -1.0, %v1822_v7  ;;  %v1823_v11 = vmul.f32 2.0, %v1576_v8  ;;  %2265 = vst.msk [vmem:[%s3596_s4 + $0x628] sm:$0xff] %vm2068_vm1, %v2743_v58  ;;  %v2744_v12 = vadd.f32 -1.0, %v1785_v53  ;;  %v1786_v13 = vmul.f32 2.0, %v1399_v9 }
 0x2cd   : > { %v1578_v14 = vpop.f32.mrf.mxu0 }
 0x2ce   : > { %2303 = vst.msk [vmem:[%s3596_s4 + $0x758] sm:$0xff] %vm2068_vm1, %v2781_v10  ;;  %v2782_v15 = vadd.f32 -1.0, %v1823_v11  ;;  %v1824_v16 = vmul.f32 2.0, %v1578_v14  ;;  %2266 = vst [vmem:[%s3596_s4 + $0x630] sm:$0xff] %v2744_v12  ;;  %v2745_v17 = vadd.f32 -1.0, %v1786_v13 }
 0x2cf   : > { %v1582_v59 = vpop.f32.mrf.mxu0 }
 0x2d0   : > { %2304 = vst [vmem:[%s3596_s4 + $0x760] sm:$0xff] %v2782_v15  ;;  %v2783_v18 = vadd.f32 -1.0, %v1824_v16  ;;  %v1825_v54 = vmul.f32 2.0, %v1582_v59  ;;  %2267 = vst.msk [vmem:[%s3596_s4 + $0x638] sm:$0xff] %vm2068_vm1, %v2745_v17 }
 0x2d1   : > { %v1584_v19 = vpop.f32.mrf.mxu0 }
 0x2d2   : > { %2305 = vst.msk [vmem:[%s3596_s4 + $0x768] sm:$0xff] %vm2068_vm1, %v2783_v18  ;;  %v2784_v0 = vadd.f32 -1.0, %v1825_v54  ;;  %v1826_v20 = vmul.f32 2.0, %v1584_v19 }
 0x2d4   : > { %2306 = vst [vmem:[%s3596_s4 + $0x770] sm:$0xff] %v2784_v0  ;;  %v2785_v21 = vadd.f32 -1.0, %v1826_v20 }
 0x2d6   : > { %2307 = vst.msk [vmem:[%s3596_s4 + $0x778] sm:$0xff] %vm2068_vm1, %v2785_v21 }
 0x2d7   : > { %2932 = shalt.err (!%p2929_p0)
}
 0x2d8   : > { %s2933_s18 = scalar_lea.hbm %s4028_s11, 30720  ;;  %s2937_s21 = scalar_lea.hbm %s4079_s3, 61440 }
 0x2d9   : > { %p2934_p5 = scmp.ne.s32.totalorder %s4028_s11, %s2933_s18  ;;  %p2938_p4 = scmp.lt.s32.totalorder %s4028_s11, %s4079_s3 }
 0x2da   : > { %p2939_p6 = scmp.lt.s32.totalorder %s2937_s21, %s2933_s18 }
 0x2db   : > { %p2935_p9 = pnand %p2934_p5, %p4095_p11 }
 0x2dc   : > { %p2940_p8 = por %p2939_p6, %p2938_p4 }
 0x2dd   : > { %p2936_p1 = pneg %p2935_p9 }
 0x2df   : > { %p2941_p3 = pnand %p2940_p8, %p2936_p1 }
 0x2e1   : > { %2944 = shalt.err (!%p2941_p3)
}
 0x2e2   : > { %s2997_s30 = smov 256   ;;  %s2998_s4 = smov 16  }
 0x2e3   : > { %2806 = dma.vmem_to_hbm [thread:$0]  (%p4095_p11), %s4030_s8, 30720, %s4028_s11, %s2309_s16, %s2997_s30, %s2997_s30, %s2998_s4  }
 0x2e4 PF: > { %s2338_s7 = sand.u32 1, %s2975_s12   ;;  %p4096_p7 = scmp.ne.s32.totalorder %s4085_s19, 0 }
 0x2e5   : > { %p4097_p12 = scmp.ge.s32.totalorder %s2987_s15, 2  ;;  %s2339_s9 = scalar_lea.sflag [#allocation4], %s2338_s7 }
 0x2e7   : > { %p2817_p10 = pnand %p4097_p12, %p4096_p7 }
 0x2e9   : > { %p2818_p2 = pneg %p2817_p10 }
 0x2eb   : > { %2970 = dma.done.wait (%p2818_p2), %s2339_s9, 30720  }
 0x2ec   : > { %2972 = vsyncadd (%p2818_p2), %s2339_s9, 4294936576  ;;  %p17_p13 = scmp.ge.s32.totalorder %s3073_s24, 4   ;;  %s4098_s12 = smov %s2979_s13 }
 0x2ed   : > { %s4099_s13 = smov %s2983_s14  ;;  %s4100_s14 = smov %s3090_s5 }
 0x2ee   : > { %s4101_s15 = smov %s3073_s24  ;;  %19 = sbr.rel (!%p17_p13) target bundleno = 6 (0x6), region = 81 }
 0x2f3   :  { %2344 = vsyncpa [#allocation3], 1 }
 0x2f4   :  { %2346 = vsyncpa [#allocation3 + $0x1], 1 }
 0x2f5   :  { %2347 = vsyncpa [#allocation6], 1 }
 0x2f6   :  { %2348 = vsyncpa [#allocation4], 1 }
 0x2f7   :  { %2350 = vsyncpa [#allocation4 + $0x1], 1 }

</bundles_post_ra>
